<compile_context>
chip_gen: v5e
topology: v5e:2x2
jax: 0.10.0
libtpu: 0.0.40
codegen_flags: <defaults>
</compile_context>

<pallas_src>
import functools

import jax
import jax.numpy as jnp
from jax.experimental import pallas as pl
from jax.experimental.pallas import tpu as pltpu


# ----------------------------------------------------------------------------
# Static slab layouts (pure-Python ints; used by both pack_params and kernel)
# ----------------------------------------------------------------------------
def _weight_layout(nfeat, nhid1, nhid2):
    entries = [
        ("w_init", nfeat,     nhid1),
        ("w_cat1", nhid1,     2 * nhid1 + nhid2),   # [SGCN1.gc1 | SGCN2.gc1 | MLP_dim]
        ("w_g2",   nhid1,     2 * nhid2),           # [SGCN1.gc2 | SGCN2.gc2]
        ("w_cg1",  nhid2,     nhid2),
        ("w_cg2",  nhid2,     nhid2),
        ("w_avg",  2 * nhid2, nhid2),
        ("w_l123", 3 * nhid2, 3 * nhid2),           # blockdiag(linear1, linear2, linear3)
        ("w_l4",   2 * nhid2, nhid2),
    ]
    lanes = ((max(c for _, _, c in entries) + 127) // 128) * 128
    off, r = {}, 0
    for name, rows, cols in entries:
        off[name] = (r, rows, cols)
        r += ((rows + 15) // 16) * 16               # keep bf16 sublane-tile alignment
    return off, r, lanes


_BIAS_ORDER = ("b_init", "b_g1_t", "b_g1_f", "b_dim", "b_g2_t", "b_g2_f",
               "b_cg1", "b_cg2", "b_avg", "b_l123", "b_l4")


def _bias_layout(nhid1, nhid2):
    widths = {"b_init": nhid1, "b_g1_t": nhid1, "b_g1_f": nhid1, "b_dim": nhid2,
              "b_g2_t": nhid2, "b_g2_f": nhid2, "b_cg1": nhid2, "b_cg2": nhid2,
              "b_avg": nhid2, "b_l123": 3 * nhid2, "b_l4": nhid2}
    off = {name: (i, widths[name]) for i, name in enumerate(_BIAS_ORDER)}
    lanes = ((max(widths.values()) + 127) // 128) * 128
    return off, len(_BIAS_ORDER), lanes


# ----------------------------------------------------------------------------
# One-time parameter preparation (hoisted out of the hot path)
# ----------------------------------------------------------------------------
def pack_params(params, nfeat, nhid1, nhid2):
    c = params["consists"]
    mats = {
        "w_init": params["mlp_init_w"],
        "w_cat1": jnp.concatenate([params["sgcn1"]["gc1_w"],
                                   params["sgcn2"]["gc1_w"],
                                   params["mlp_dim_w"]], axis=1),
        "w_g2":   jnp.concatenate([params["sgcn1"]["gc2_w"],
                                   params["sgcn2"]["gc2_w"]], axis=1),
        "w_cg1":  params["cgcn"]["gc1_w"],
        "w_cg2":  params["cgcn"]["gc2_w"],
        "w_avg":  params["mlpavg_w"],
        "w_l123": jax.scipy.linalg.block_diag(c["l1_w"], c["l2_w"], c["l3_w"]),
        "w_l4":   c["l4_w"],
    }
    w_off, w_rows, w_lanes = _weight_layout(nfeat, nhid1, nhid2)
    w_slab = jnp.zeros((w_rows, w_lanes), jnp.bfloat16)
    for name, (r0, rows, cols) in w_off.items():
        w_slab = w_slab.at[r0:r0 + rows, :cols].set(mats[name].astype(jnp.bfloat16))

    bs = {
        "b_init": params["mlp_init_b"],
        "b_g1_t": params["sgcn1"]["gc1_b"], "b_g1_f": params["sgcn2"]["gc1_b"],
        "b_dim":  params["mlp_dim_b"],
        "b_g2_t": params["sgcn1"]["gc2_b"], "b_g2_f": params["sgcn2"]["gc2_b"],
        "b_cg1":  params["cgcn"]["gc1_b"],  "b_cg2":  params["cgcn"]["gc2_b"],
        "b_avg":  params["mlpavg_b"],
        "b_l123": jnp.concatenate([c["l1_b"], c["l2_b"], c["l3_b"]], axis=1),
        "b_l4":   c["l4_b"],
    }
    b_off, b_rows, b_lanes = _bias_layout(nhid1, nhid2)
    b_slab = jnp.zeros((b_rows, b_lanes), jnp.float32)
    for name, (row, width) in b_off.items():
        b_slab = b_slab.at[row, :width].set(bs[name][0].astype(jnp.float32))
    return w_slab, b_slab


# ----------------------------------------------------------------------------
# The single fused Pallas kernel
# ----------------------------------------------------------------------------
def _fs(shape):
    # Whole-array block (block dims == full array dims), grid=(1,).
    return pl.BlockSpec(shape, lambda i: (0,) * len(shape))


def _sfgcn_kernel(x_ref, adj_ref, w_ref, b_ref, out_ref, *,
                  nhid1, nhid2, alpha, w_off, b_off):
    f32, bf16 = jnp.float32, jnp.bfloat16
    n = x_ref.shape[0]

    def W(name):                                   # bf16 weight tile (lane offset 0)
        r0, rows, cols = w_off[name]
        return w_ref[pl.ds(r0, rows), pl.ds(0, cols)]

    def B(name):                                   # (1, width) f32 bias row
        row, width = b_off[name]
        return b_ref[pl.ds(row, 1), pl.ds(0, width)]

    def mm(a, b):                                  # bf16 MXU operands, f32 accumulate
        return jnp.dot(a.astype(bf16), b.astype(bf16), preferred_element_type=f32)

    def log_softmax(y):                            # dim=1 of 2-D tensor, stabilized
        m = jnp.max(y, axis=-1, keepdims=True)
        s = y - m
        return s - jnp.log(jnp.sum(jnp.exp(s), axis=-1, keepdims=True))

    adj = adj_ref[...]                             # (2n, 2n) bf16 = blockdiag(sadj, fadj)
    row = jax.lax.broadcasted_iota(jnp.int32, (2 * n, 1), 0)
    top = row < n                                  # sadj-branch rows of the (2n, .) stacks

    def bsel(bt, bf):                              # per-branch bias for stacked rows
        return jnp.where(top, B(bt), B(bf))

    # ---- MLP_init -----------------------------------------------------------
    x0 = mm(x_ref[...], W("w_init")) + B("b_init")                     # (n, nhid1)

    # ---- shared-input matmul: [SGCN1.gc1 | SGCN2.gc1 | MLP_dim] -------------
    sup_cat = mm(x0, W("w_cat1"))                                      # (n, 2*nhid1+nhid2)
    xd = sup_cat[:, 2 * nhid1:] + B("b_dim")                           # MLP_dim output

    # ---- SGCN layer 1: both branches via ONE blockdiag-adjacency matmul -----
    s1 = jnp.concatenate([sup_cat[:, :nhid1], sup_cat[:, nhid1:2 * nhid1]], axis=0)
    h = jnp.maximum(mm(adj, s1) + bsel("b_g1_t", "b_g1_f"), 0.0)       # [h1; h2] (2n, nhid1)

    # ---- SGCN layer 2: lane-concat weights, per-row-half support select -----
    t = mm(h, W("w_g2"))                                               # (2n, 2*nhid2)
    s2 = jnp.where(top, t[:, :nhid2], t[:, nhid2:])                    # [h1@W1; h2@W2]
    emb = mm(adj, s2) + bsel("b_g2_t", "b_g2_f")                       # [emb1; emb2]
    emb1, emb2 = emb[:n], emb[n:]

    # ---- CGCN on the alpha-combined embeddings (shared weights) -------------
    embc = alpha * emb + (1.0 - alpha) * jnp.concatenate([xd, xd], axis=0)
    hc = jnp.maximum(mm(adj, mm(embc, W("w_cg1"))) + B("b_cg1"), 0.0)  # [hc1; hc2]
    com = mm(adj, mm(hc, W("w_cg2"))) + B("b_cg2")                     # [com1; com2]
    com1, com2 = com[:n], com[n:]

    # ---- MLPavg --------------------------------------------------------------
    xcom = mm(jnp.concatenate([com1, com2], axis=-1), W("w_avg")) + B("b_avg")

    # ---- consists: 3 attention branches packed block-diagonally -------------
    zcat = jnp.concatenate([emb1, emb2, xcom], axis=-1)                # (n, 3*nhid2)
    y3 = jnp.tanh(mm(zcat, W("w_l123")) + B("b_l123"))
    at = log_softmax(y3[:, :nhid2])
    af = log_softmax(y3[:, nhid2:2 * nhid2])
    ac1 = log_softmax(y3[:, 2 * nhid2:])                               # ac2 == ac1

    ztc = at * emb1 + ac1 * xcom
    zfc = af * emb2 + ac1 * xcom
    out1 = log_softmax(mm(jnp.concatenate([ztc, zfc], axis=-1), W("w_l4")) + B("b_l4"))

    # ---- single lane-dense (n, 8*nhid2) writeback ----------------------------
    out_ref[...] = jnp.concatenate(
        [out1, emb1, com1, com2, emb2, at, af, ac1], axis=-1)


# ----------------------------------------------------------------------------
# Wrapper: per-call data prep (blockdiag adjacency, bf16 cast) + ONE pallas_call
# ----------------------------------------------------------------------------
@functools.partial(jax.jit, static_argnames=("nfeat", "nhid1", "nhid2", "alpha"))
def sfgcn_forward(w_slab, b_slab, x, sadj, fadj, *, nfeat, nhid1, nhid2, alpha=0.85):
    n = x.shape[0]
    bf16 = jnp.bfloat16
    zero = jnp.zeros((n, n), sadj.dtype)
    adj = jnp.concatenate(
        [jnp.concatenate([sadj, zero], axis=1),
         jnp.concatenate([zero, fadj], axis=1)], axis=0).astype(bf16)  # blockdiag(sadj,fadj)

    w_off, _, _ = _weight_layout(nfeat, nhid1, nhid2)
    b_off, _, _ = _bias_layout(nhid1, nhid2)

    slab = pl.pallas_call(
        functools.partial(_sfgcn_kernel, nhid1=nhid1, nhid2=nhid2, alpha=alpha,
                          w_off=w_off, b_off=b_off),
        out_shape=jax.ShapeDtypeStruct((n, 8 * nhid2), jnp.float32),
        grid=(1,),
        in_specs=[_fs(x.shape), _fs(adj.shape), _fs(w_slab.shape), _fs(b_slab.shape)],
        out_specs=_fs((n, 8 * nhid2)),
        compiler_params=pltpu.CompilerParams(dimension_semantics=("arbitrary",)),
    )(x.astype(bf16), adj, w_slab, b_slab)

    out1, emb1, com1, com2, emb2, at, af, ac1 = [
        slab[:, i * nhid2:(i + 1) * nhid2] for i in range(8)]
    lst = [at, af, ac1, ac1]       # ac2/xc2 duplicate ac1/xc1 in the reference
    return out1, emb1, com1, com2, emb2, emb2, lst


# ----------------------------------------------------------------------------
# Deterministic parameter init (nn.Linear-style uniform(-1/sqrt(fan_in), ...))
# ----------------------------------------------------------------------------
def init_linear(key, fan_in, fan_out):
    kw, kb = jax.random.split(key)
    bound = 1.0 / (fan_in ** 0.5)
    w = jax.random.uniform(kw, (fan_in, fan_out), jnp.float32, -bound, bound)
    b = jax.random.uniform(kb, (1, fan_out), jnp.float32, -bound, bound)
    return w, b


def init_params(key, nfeat, nhid1, nhid2):
    keys = iter(jax.random.split(key, 16))

    def gcn_params(din, dhid, dout):
        w1, b1 = init_linear(next(keys), din, dhid)
        w2, b2 = init_linear(next(keys), dhid, dout)
        return {"gc1_w": w1, "gc1_b": b1, "gc2_w": w2, "gc2_b": b2}

    params = {}
    params["mlp_init_w"], params["mlp_init_b"] = init_linear(next(keys), nfeat, nhid1)
    params["mlp_dim_w"], params["mlp_dim_b"] = init_linear(next(keys), nhid1, nhid2)
    params["sgcn1"] = gcn_params(nhid1, nhid1, nhid2)
    params["sgcn2"] = gcn_params(nhid1, nhid1, nhid2)
    params["cgcn"] = gcn_params(nhid2, nhid2, nhid2)
    params["mlpavg_w"], params["mlpavg_b"] = init_linear(next(keys), 2 * nhid2, nhid2)
    c = {}
    c["l1_w"], c["l1_b"] = init_linear(next(keys), nhid2, nhid2)
    c["l2_w"], c["l2_b"] = init_linear(next(keys), nhid2, nhid2)
    c["l3_w"], c["l3_b"] = init_linear(next(keys), nhid2, nhid2)
    c["l4_w"], c["l4_b"] = init_linear(next(keys), 2 * nhid2, nhid2)
    params["consists"] = c
    return params


# ----------------------------------------------------------------------------
if __name__ == "__main__":
    key = jax.random.PRNGKey(0)
    n, nfeat, nhid1, nhid2 = 64, 16, 32, 32

    k_p, k_x, k_s, k_f = jax.random.split(key, 4)
    params = init_params(k_p, nfeat, nhid1, nhid2)
    w_slab, b_slab = pack_params(params, nfeat, nhid1, nhid2)   # one-time prep

    x = jax.random.normal(k_x, (n, nfeat), jnp.float32)
    # simple row-normalized dense adjacencies (self-loops included)
    sadj_raw = (jax.random.uniform(k_s, (n, n)) < 0.1).astype(jnp.float32) + jnp.eye(n)
    fadj_raw = (jax.random.uniform(k_f, (n, n)) < 0.1).astype(jnp.float32) + jnp.eye(n)
    sadj = sadj_raw / jnp.sum(sadj_raw, axis=1, keepdims=True)
    fadj = fadj_raw / jnp.sum(fadj_raw, axis=1, keepdims=True)

    out = sfgcn_forward(w_slab, b_slab, x, sadj, fadj,
                        nfeat=nfeat, nhid1=nhid1, nhid2=nhid2)
    output1, emb1, com1, com2, emb2, emb2b, lst = jax.block_until_ready(out)

    # sanity checks on shapes / values
    assert output1.shape == (n, nhid2)
    assert emb1.shape == (n, nhid2) and com1.shape == (n, nhid2)
    assert com2.shape == (n, nhid2) and emb2.shape == (n, nhid2)
    assert len(lst) == 4 and all(a.shape == (n, nhid2) for a in lst)
    assert bool(jnp.all(jnp.isfinite(output1)))
    # log_softmax rows must sum (in prob space) to ~1
    assert bool(jnp.all(jnp.abs(jnp.sum(jnp.exp(output1), axis=-1) - 1.0) < 1e-2))
    assert bool(jnp.all(jnp.abs(jnp.sum(jnp.exp(lst[0]), axis=-1) - 1.0) < 1e-2))

    print("KERNEL_OK")
</pallas_src>

<mosaic_0001>
module attributes {stable_mosaic.version = 11 : i64} {
  func.func @_sfgcn_kernel(%arg0: i32, %arg1: memref<64x16xbf16, #tpu.memory_space<vmem>>, %arg2: memref<128x128xbf16, #tpu.memory_space<vmem>>, %arg3: memref<368x128xbf16, #tpu.memory_space<vmem>>, %arg4: memref<11x128xf32, #tpu.memory_space<vmem>>, %arg5: memref<64x256xf32, #tpu.memory_space<vmem>>) attributes {dimension_semantics = [#tpu.dimension_semantics<arbitrary>], iteration_bounds = array<i64: 1>, scalar_prefetch = 0 : i64, scratch_operands = 0 : i64, tpu.core_type = #tpu.core_type<tc>, window_params = [{pipeline_mode = #tpu.pipeline_mode<synchronous>, transform_indices = @transform_0, window_bounds = array<i64: 64, 16>}, {pipeline_mode = #tpu.pipeline_mode<synchronous>, transform_indices = @transform_1, window_bounds = array<i64: 128, 128>}, {pipeline_mode = #tpu.pipeline_mode<synchronous>, transform_indices = @transform_2, window_bounds = array<i64: 368, 128>}, {pipeline_mode = #tpu.pipeline_mode<synchronous>, transform_indices = @transform_3, window_bounds = array<i64: 11, 128>}, {pipeline_mode = #tpu.pipeline_mode<synchronous>, transform_indices = @transform_4, window_bounds = array<i64: 64, 256>}]} {
    %c0 = arith.constant 0 : index
    %c0_0 = arith.constant 0 : index
    %0 = vector.load %arg2[%c0, %c0_0] : memref<128x128xbf16, #tpu.memory_space<vmem>>, vector<128x128xbf16>
    %1 = tpu.iota {dimensions = array<i32: 0>} : vector<128x1xi32>
    %c64_i32 = arith.constant 64 : i32
    %2 = vector.broadcast %c64_i32 : i32 to vector<128x1xi32>
    %3 = arith.cmpi slt, %1, %2 : vector<128x1xi32>
    %c0_1 = arith.constant 0 : index
    %c0_2 = arith.constant 0 : index
    %4 = vector.load %arg1[%c0_1, %c0_2] : memref<64x16xbf16, #tpu.memory_space<vmem>>, vector<64x16xbf16>
    %c0_3 = arith.constant 0 : index
    %c0_4 = arith.constant 0 : index
    %5 = vector.load %arg3[%c0_3, %c0_4] : memref<368x128xbf16, #tpu.memory_space<vmem>>, vector<16x32xbf16>
    %cst = arith.constant dense<0.000000e+00> : vector<64x32xf32>
    %6 = tpu.matmul %4, %5, %cst {dimension_numbers = #tpu.dot_dimension_numbers<[1], [0], [0], [1], [0, 0, 1, 1], [], []>} : vector<64x16xbf16>, vector<16x32xbf16>, vector<64x32xf32> -> vector<64x32xf32>
    %c0_5 = arith.constant 0 : index
    %c0_6 = arith.constant 0 : index
    %7 = vector.load %arg4[%c0_5, %c0_6] : memref<11x128xf32, #tpu.memory_space<vmem>>, vector<1x32xf32>
    %8 = vector.broadcast %7 : vector<1x32xf32> to vector<64x32xf32>
    %9 = arith.addf %6, %8 : vector<64x32xf32>
    %c16 = arith.constant 16 : index
    %c0_7 = arith.constant 0 : index
    %10 = vector.load %arg3[%c16, %c0_7] : memref<368x128xbf16, #tpu.memory_space<vmem>>, vector<32x96xbf16>
    %11 = arith.truncf %9 : vector<64x32xf32> to vector<64x32xbf16>
    %cst_8 = arith.constant dense<0.000000e+00> : vector<64x96xf32>
    %12 = tpu.matmul %11, %10, %cst_8 {dimension_numbers = #tpu.dot_dimension_numbers<[1], [0], [0], [1], [0, 0, 1, 1], [], []>} : vector<64x32xbf16>, vector<32x96xbf16>, vector<64x96xf32> -> vector<64x96xf32>
    %13 = vector.extract_strided_slice %12 {offsets = [0, 64], sizes = [64, 32], strides = [1, 1]} : vector<64x96xf32> to vector<64x32xf32>
    %c3 = arith.constant 3 : index
    %c0_9 = arith.constant 0 : index
    %14 = vector.load %arg4[%c3, %c0_9] : memref<11x128xf32, #tpu.memory_space<vmem>>, vector<1x32xf32>
    %15 = vector.broadcast %14 : vector<1x32xf32> to vector<64x32xf32>
    %16 = arith.addf %13, %15 : vector<64x32xf32>
    %17 = vector.extract_strided_slice %12 {offsets = [0, 0], sizes = [64, 32], strides = [1, 1]} : vector<64x96xf32> to vector<64x32xf32>
    %18 = vector.extract_strided_slice %12 {offsets = [0, 32], sizes = [64, 32], strides = [1, 1]} : vector<64x96xf32> to vector<64x32xf32>
    %19 = tpu.concatenate %17, %18 in 0 : vector<64x32xf32>, vector<64x32xf32> -> vector<128x32xf32>
    %20 = arith.truncf %19 : vector<128x32xf32> to vector<128x32xbf16>
    %cst_10 = arith.constant dense<0.000000e+00> : vector<128x32xf32>
    %21 = tpu.matmul %0, %20, %cst_10 {dimension_numbers = #tpu.dot_dimension_numbers<[1], [0], [0], [1], [0, 0, 1, 1], [], []>} : vector<128x128xbf16>, vector<128x32xbf16>, vector<128x32xf32> -> vector<128x32xf32>
    %c1 = arith.constant 1 : index
    %c0_11 = arith.constant 0 : index
    %22 = vector.load %arg4[%c1, %c0_11] : memref<11x128xf32, #tpu.memory_space<vmem>>, vector<1x32xf32>
    %c2 = arith.constant 2 : index
    %c0_12 = arith.constant 0 : index
    %23 = vector.load %arg4[%c2, %c0_12] : memref<11x128xf32, #tpu.memory_space<vmem>>, vector<1x32xf32>
    %24 = vector.shape_cast %3 : vector<128x1xi1> to vector<128x1xi1>
    %25 = vector.broadcast %24 : vector<128x1xi1> to vector<128x32xi1>
    %26 = vector.shape_cast %22 : vector<1x32xf32> to vector<1x32xf32>
    %27 = vector.broadcast %26 : vector<1x32xf32> to vector<128x32xf32>
    %28 = vector.shape_cast %23 : vector<1x32xf32> to vector<1x32xf32>
    %29 = vector.broadcast %28 : vector<1x32xf32> to vector<128x32xf32>
    %30 = arith.select %25, %27, %29 : vector<128x32xi1>, vector<128x32xf32>
    %31 = arith.addf %21, %30 : vector<128x32xf32>
    %cst_13 = arith.constant 0.000000e+00 : f32
    %32 = vector.broadcast %cst_13 : f32 to vector<128x32xf32>
    %33 = arith.maximumf %31, %32 : vector<128x32xf32>
    %c48 = arith.constant 48 : index
    %c0_14 = arith.constant 0 : index
    %34 = vector.load %arg3[%c48, %c0_14] : memref<368x128xbf16, #tpu.memory_space<vmem>>, vector<32x64xbf16>
    %35 = arith.truncf %33 : vector<128x32xf32> to vector<128x32xbf16>
    %cst_15 = arith.constant dense<0.000000e+00> : vector<128x64xf32>
    %36 = tpu.matmul %35, %34, %cst_15 {dimension_numbers = #tpu.dot_dimension_numbers<[1], [0], [0], [1], [0, 0, 1, 1], [], []>} : vector<128x32xbf16>, vector<32x64xbf16>, vector<128x64xf32> -> vector<128x64xf32>
    %37 = vector.extract_strided_slice %36 {offsets = [0, 0], sizes = [128, 32], strides = [1, 1]} : vector<128x64xf32> to vector<128x32xf32>
    %38 = vector.extract_strided_slice %36 {offsets = [0, 32], sizes = [128, 32], strides = [1, 1]} : vector<128x64xf32> to vector<128x32xf32>
    %39 = vector.shape_cast %3 : vector<128x1xi1> to vector<128x1xi1>
    %40 = vector.broadcast %39 : vector<128x1xi1> to vector<128x32xi1>
    %41 = arith.select %40, %37, %38 : vector<128x32xi1>, vector<128x32xf32>
    %42 = arith.truncf %41 : vector<128x32xf32> to vector<128x32xbf16>
    %cst_16 = arith.constant dense<0.000000e+00> : vector<128x32xf32>
    %43 = tpu.matmul %0, %42, %cst_16 {dimension_numbers = #tpu.dot_dimension_numbers<[1], [0], [0], [1], [0, 0, 1, 1], [], []>} : vector<128x128xbf16>, vector<128x32xbf16>, vector<128x32xf32> -> vector<128x32xf32>
    %c4 = arith.constant 4 : index
    %c0_17 = arith.constant 0 : index
    %44 = vector.load %arg4[%c4, %c0_17] : memref<11x128xf32, #tpu.memory_space<vmem>>, vector<1x32xf32>
    %c5 = arith.constant 5 : index
    %c0_18 = arith.constant 0 : index
    %45 = vector.load %arg4[%c5, %c0_18] : memref<11x128xf32, #tpu.memory_space<vmem>>, vector<1x32xf32>
    %46 = vector.shape_cast %3 : vector<128x1xi1> to vector<128x1xi1>
    %47 = vector.broadcast %46 : vector<128x1xi1> to vector<128x32xi1>
    %48 = vector.shape_cast %44 : vector<1x32xf32> to vector<1x32xf32>
    %49 = vector.broadcast %48 : vector<1x32xf32> to vector<128x32xf32>
    %50 = vector.shape_cast %45 : vector<1x32xf32> to vector<1x32xf32>
    %51 = vector.broadcast %50 : vector<1x32xf32> to vector<128x32xf32>
    %52 = arith.select %47, %49, %51 : vector<128x32xi1>, vector<128x32xf32>
    %53 = arith.addf %43, %52 : vector<128x32xf32>
    %54 = vector.extract_strided_slice %53 {offsets = [0, 0], sizes = [64, 32], strides = [1, 1]} : vector<128x32xf32> to vector<64x32xf32>
    %55 = vector.extract_strided_slice %53 {offsets = [64, 0], sizes = [64, 32], strides = [1, 1]} : vector<128x32xf32> to vector<64x32xf32>
    %cst_19 = arith.constant 8.500000e-01 : f32
    %56 = vector.broadcast %cst_19 : f32 to vector<128x32xf32>
    %57 = arith.mulf %56, %53 : vector<128x32xf32>
    %58 = tpu.concatenate %16, %16 in 0 : vector<64x32xf32>, vector<64x32xf32> -> vector<128x32xf32>
    %cst_20 = arith.constant 1.500000e-01 : f32
    %59 = vector.broadcast %cst_20 : f32 to vector<128x32xf32>
    %60 = arith.mulf %59, %58 : vector<128x32xf32>
    %61 = arith.addf %57, %60 : vector<128x32xf32>
    %c80 = arith.constant 80 : index
    %c0_21 = arith.constant 0 : index
    %62 = vector.load %arg3[%c80, %c0_21] : memref<368x128xbf16, #tpu.memory_space<vmem>>, vector<32x32xbf16>
    %63 = arith.truncf %61 : vector<128x32xf32> to vector<128x32xbf16>
    %cst_22 = arith.constant dense<0.000000e+00> : vector<128x32xf32>
    %64 = tpu.matmul %63, %62, %cst_22 {dimension_numbers = #tpu.dot_dimension_numbers<[1], [0], [0], [1], [0, 0, 1, 1], [], []>} : vector<128x32xbf16>, vector<32x32xbf16>, vector<128x32xf32> -> vector<128x32xf32>
    %65 = arith.truncf %64 : vector<128x32xf32> to vector<128x32xbf16>
    %cst_23 = arith.constant dense<0.000000e+00> : vector<128x32xf32>
    %66 = tpu.matmul %0, %65, %cst_23 {dimension_numbers = #tpu.dot_dimension_numbers<[1], [0], [0], [1], [0, 0, 1, 1], [], []>} : vector<128x128xbf16>, vector<128x32xbf16>, vector<128x32xf32> -> vector<128x32xf32>
    %c6 = arith.constant 6 : index
    %c0_24 = arith.constant 0 : index
    %67 = vector.load %arg4[%c6, %c0_24] : memref<11x128xf32, #tpu.memory_space<vmem>>, vector<1x32xf32>
    %68 = vector.broadcast %67 : vector<1x32xf32> to vector<128x32xf32>
    %69 = arith.addf %66, %68 : vector<128x32xf32>
    %cst_25 = arith.constant 0.000000e+00 : f32
    %70 = vector.broadcast %cst_25 : f32 to vector<128x32xf32>
    %71 = arith.maximumf %69, %70 : vector<128x32xf32>
    %c112 = arith.constant 112 : index
    %c0_26 = arith.constant 0 : index
    %72 = vector.load %arg3[%c112, %c0_26] : memref<368x128xbf16, #tpu.memory_space<vmem>>, vector<32x32xbf16>
    %73 = arith.truncf %71 : vector<128x32xf32> to vector<128x32xbf16>
    %cst_27 = arith.constant dense<0.000000e+00> : vector<128x32xf32>
    %74 = tpu.matmul %73, %72, %cst_27 {dimension_numbers = #tpu.dot_dimension_numbers<[1], [0], [0], [1], [0, 0, 1, 1], [], []>} : vector<128x32xbf16>, vector<32x32xbf16>, vector<128x32xf32> -> vector<128x32xf32>
    %75 = arith.truncf %74 : vector<128x32xf32> to vector<128x32xbf16>
    %cst_28 = arith.constant dense<0.000000e+00> : vector<128x32xf32>
    %76 = tpu.matmul %0, %75, %cst_28 {dimension_numbers = #tpu.dot_dimension_numbers<[1], [0], [0], [1], [0, 0, 1, 1], [], []>} : vector<128x128xbf16>, vector<128x32xbf16>, vector<128x32xf32> -> vector<128x32xf32>
    %c7 = arith.constant 7 : index
    %c0_29 = arith.constant 0 : index
    %77 = vector.load %arg4[%c7, %c0_29] : memref<11x128xf32, #tpu.memory_space<vmem>>, vector<1x32xf32>
    %78 = vector.broadcast %77 : vector<1x32xf32> to vector<128x32xf32>
    %79 = arith.addf %76, %78 : vector<128x32xf32>
    %80 = vector.extract_strided_slice %79 {offsets = [0, 0], sizes = [64, 32], strides = [1, 1]} : vector<128x32xf32> to vector<64x32xf32>
    %81 = vector.extract_strided_slice %79 {offsets = [64, 0], sizes = [64, 32], strides = [1, 1]} : vector<128x32xf32> to vector<64x32xf32>
    %82 = tpu.concatenate %80, %81 in 1 : vector<64x32xf32>, vector<64x32xf32> -> vector<64x64xf32>
    %c144 = arith.constant 144 : index
    %c0_30 = arith.constant 0 : index
    %83 = vector.load %arg3[%c144, %c0_30] : memref<368x128xbf16, #tpu.memory_space<vmem>>, vector<64x32xbf16>
    %84 = arith.truncf %82 : vector<64x64xf32> to vector<64x64xbf16>
    %cst_31 = arith.constant dense<0.000000e+00> : vector<64x32xf32>
    %85 = tpu.matmul %84, %83, %cst_31 {dimension_numbers = #tpu.dot_dimension_numbers<[1], [0], [0], [1], [0, 0, 1, 1], [], []>} : vector<64x64xbf16>, vector<64x32xbf16>, vector<64x32xf32> -> vector<64x32xf32>
    %c8 = arith.constant 8 : index
    %c0_32 = arith.constant 0 : index
    %86 = vector.load %arg4[%c8, %c0_32] : memref<11x128xf32, #tpu.memory_space<vmem>>, vector<1x32xf32>
    %87 = vector.broadcast %86 : vector<1x32xf32> to vector<64x32xf32>
    %88 = arith.addf %85, %87 : vector<64x32xf32>
    %89 = tpu.concatenate %54, %55, %88 in 1 : vector<64x32xf32>, vector<64x32xf32>, vector<64x32xf32> -> vector<64x96xf32>
    %c208 = arith.constant 208 : index
    %c0_33 = arith.constant 0 : index
    %90 = vector.load %arg3[%c208, %c0_33] : memref<368x128xbf16, #tpu.memory_space<vmem>>, vector<96x96xbf16>
    %91 = arith.truncf %89 : vector<64x96xf32> to vector<64x96xbf16>
    %cst_34 = arith.constant dense<0.000000e+00> : vector<64x96xf32>
    %92 = tpu.matmul %91, %90, %cst_34 {dimension_numbers = #tpu.dot_dimension_numbers<[1], [0], [0], [1], [0, 0, 1, 1], [], []>} : vector<64x96xbf16>, vector<96x96xbf16>, vector<64x96xf32> -> vector<64x96xf32>
    %c9 = arith.constant 9 : index
    %c0_35 = arith.constant 0 : index
    %93 = vector.load %arg4[%c9, %c0_35] : memref<11x128xf32, #tpu.memory_space<vmem>>, vector<1x96xf32>
    %94 = vector.broadcast %93 : vector<1x96xf32> to vector<64x96xf32>
    %95 = arith.addf %92, %94 : vector<64x96xf32>
    %96 = math.tanh %95 : vector<64x96xf32>
    %97 = vector.extract_strided_slice %96 {offsets = [0, 0], sizes = [64, 32], strides = [1, 1]} : vector<64x96xf32> to vector<64x32xf32>
    %cst_36 = arith.constant dense<0xFF800000> : vector<64xf32>
    %98 = vector.multi_reduction <maximumf>, %97, %cst_36 [1] : vector<64x32xf32> to vector<64xf32>
    %99 = vector.shape_cast %98 : vector<64xf32> to vector<64x1xf32>
    %100 = vector.broadcast %99 : vector<64x1xf32> to vector<64x32xf32>
    %101 = arith.subf %97, %100 : vector<64x32xf32>
    %102 = math.exp %101 : vector<64x32xf32>
    %cst_37 = arith.constant dense<0.000000e+00> : vector<64xf32>
    %103 = vector.multi_reduction <add>, %102, %cst_37 [1] : vector<64x32xf32> to vector<64xf32>
    %104 = vector.shape_cast %103 : vector<64xf32> to vector<64x1xf32>
    %105 = math.log %104 : vector<64x1xf32>
    %106 = vector.broadcast %105 : vector<64x1xf32> to vector<64x32xf32>
    %107 = arith.subf %101, %106 : vector<64x32xf32>
    %108 = vector.extract_strided_slice %96 {offsets = [0, 32], sizes = [64, 32], strides = [1, 1]} : vector<64x96xf32> to vector<64x32xf32>
    %cst_38 = arith.constant dense<0xFF800000> : vector<64xf32>
    %109 = vector.multi_reduction <maximumf>, %108, %cst_38 [1] : vector<64x32xf32> to vector<64xf32>
    %110 = vector.shape_cast %109 : vector<64xf32> to vector<64x1xf32>
    %111 = vector.broadcast %110 : vector<64x1xf32> to vector<64x32xf32>
    %112 = arith.subf %108, %111 : vector<64x32xf32>
    %113 = math.exp %112 : vector<64x32xf32>
    %cst_39 = arith.constant dense<0.000000e+00> : vector<64xf32>
    %114 = vector.multi_reduction <add>, %113, %cst_39 [1] : vector<64x32xf32> to vector<64xf32>
    %115 = vector.shape_cast %114 : vector<64xf32> to vector<64x1xf32>
    %116 = math.log %115 : vector<64x1xf32>
    %117 = vector.broadcast %116 : vector<64x1xf32> to vector<64x32xf32>
    %118 = arith.subf %112, %117 : vector<64x32xf32>
    %119 = vector.extract_strided_slice %96 {offsets = [0, 64], sizes = [64, 32], strides = [1, 1]} : vector<64x96xf32> to vector<64x32xf32>
    %cst_40 = arith.constant dense<0xFF800000> : vector<64xf32>
    %120 = vector.multi_reduction <maximumf>, %119, %cst_40 [1] : vector<64x32xf32> to vector<64xf32>
    %121 = vector.shape_cast %120 : vector<64xf32> to vector<64x1xf32>
    %122 = vector.broadcast %121 : vector<64x1xf32> to vector<64x32xf32>
    %123 = arith.subf %119, %122 : vector<64x32xf32>
    %124 = math.exp %123 : vector<64x32xf32>
    %cst_41 = arith.constant dense<0.000000e+00> : vector<64xf32>
    %125 = vector.multi_reduction <add>, %124, %cst_41 [1] : vector<64x32xf32> to vector<64xf32>
    %126 = vector.shape_cast %125 : vector<64xf32> to vector<64x1xf32>
    %127 = math.log %126 : vector<64x1xf32>
    %128 = vector.broadcast %127 : vector<64x1xf32> to vector<64x32xf32>
    %129 = arith.subf %123, %128 : vector<64x32xf32>
    %130 = arith.mulf %107, %54 : vector<64x32xf32>
    %131 = arith.mulf %129, %88 : vector<64x32xf32>
    %132 = arith.addf %130, %131 : vector<64x32xf32>
    %133 = arith.mulf %118, %55 : vector<64x32xf32>
    %134 = arith.mulf %129, %88 : vector<64x32xf32>
    %135 = arith.addf %133, %134 : vector<64x32xf32>
    %136 = tpu.concatenate %132, %135 in 1 : vector<64x32xf32>, vector<64x32xf32> -> vector<64x64xf32>
    %c304 = arith.constant 304 : index
    %c0_42 = arith.constant 0 : index
    %137 = vector.load %arg3[%c304, %c0_42] : memref<368x128xbf16, #tpu.memory_space<vmem>>, vector<64x32xbf16>
    %138 = arith.truncf %136 : vector<64x64xf32> to vector<64x64xbf16>
    %cst_43 = arith.constant dense<0.000000e+00> : vector<64x32xf32>
    %139 = tpu.matmul %138, %137, %cst_43 {dimension_numbers = #tpu.dot_dimension_numbers<[1], [0], [0], [1], [0, 0, 1, 1], [], []>} : vector<64x64xbf16>, vector<64x32xbf16>, vector<64x32xf32> -> vector<64x32xf32>
    %c10 = arith.constant 10 : index
    %c0_44 = arith.constant 0 : index
    %140 = vector.load %arg4[%c10, %c0_44] : memref<11x128xf32, #tpu.memory_space<vmem>>, vector<1x32xf32>
    %141 = vector.broadcast %140 : vector<1x32xf32> to vector<64x32xf32>
    %142 = arith.addf %139, %141 : vector<64x32xf32>
    %cst_45 = arith.constant dense<0xFF800000> : vector<64xf32>
    %143 = vector.multi_reduction <maximumf>, %142, %cst_45 [1] : vector<64x32xf32> to vector<64xf32>
    %144 = vector.shape_cast %143 : vector<64xf32> to vector<64x1xf32>
    %145 = vector.broadcast %144 : vector<64x1xf32> to vector<64x32xf32>
    %146 = arith.subf %142, %145 : vector<64x32xf32>
    %147 = math.exp %146 : vector<64x32xf32>
    %cst_46 = arith.constant dense<0.000000e+00> : vector<64xf32>
    %148 = vector.multi_reduction <add>, %147, %cst_46 [1] : vector<64x32xf32> to vector<64xf32>
    %149 = vector.shape_cast %148 : vector<64xf32> to vector<64x1xf32>
    %150 = math.log %149 : vector<64x1xf32>
    %151 = vector.broadcast %150 : vector<64x1xf32> to vector<64x32xf32>
    %152 = arith.subf %146, %151 : vector<64x32xf32>
    %153 = tpu.concatenate %152, %54, %80, %81, %55, %107, %118, %129 in 1 : vector<64x32xf32>, vector<64x32xf32>, vector<64x32xf32>, vector<64x32xf32>, vector<64x32xf32>, vector<64x32xf32>, vector<64x32xf32>, vector<64x32xf32> -> vector<64x256xf32>
    %c0_47 = arith.constant 0 : index
    %c0_48 = arith.constant 0 : index
    %154 = vector.load %arg5[%c0_47, %c0_48] : memref<64x256xf32, #tpu.memory_space<vmem>>, vector<64x256xf32>
    tpu.vector_store %arg5[%c0_47, %c0_48], %153 {strides = array<i32>} : memref<64x256xf32, #tpu.memory_space<vmem>>, vector<64x256xf32>,
    return
  }
  func.func @transform_0(%arg0: i32) -> (i32, i32) {
    %c0_i32 = arith.constant 0 : i32
    %c0_i32_0 = arith.constant 0 : i32
    %c0_i32_1 = arith.constant 0 : i32
    return %c0_i32, %c0_i32_0 : i32, i32
  }
  func.func @transform_1(%arg0: i32) -> (i32, i32) {
    %c0_i32 = arith.constant 0 : i32
    %c0_i32_0 = arith.constant 0 : i32
    %c0_i32_1 = arith.constant 0 : i32
    return %c0_i32, %c0_i32_0 : i32, i32
  }
  func.func @transform_2(%arg0: i32) -> (i32, i32) {
    %c0_i32 = arith.constant 0 : i32
    %c0_i32_0 = arith.constant 0 : i32
    %c0_i32_1 = arith.constant 0 : i32
    return %c0_i32, %c0_i32_0 : i32, i32
  }
  func.func @transform_3(%arg0: i32) -> (i32, i32) {
    %c0_i32 = arith.constant 0 : i32
    %c0_i32_0 = arith.constant 0 : i32
    %c0_i32_1 = arith.constant 0 : i32
    return %c0_i32, %c0_i32_0 : i32, i32
  }
  func.func @transform_4(%arg0: i32) -> (i32, i32) {
    %c0_i32 = arith.constant 0 : i32
    %c0_i32_0 = arith.constant 0 : i32
    %c0_i32_1 = arith.constant 0 : i32
    return %c0_i32, %c0_i32_0 : i32, i32
  }
}

</mosaic_0001>

<bundles_post_ra>
// kernel: sfgcn_forward.1
= control target key start
LH: loop header
LB: loop body
LE: loop exit
PB: predicated region body
PF: predicated region fallthrough
CT: control target
= control target key end

     0   :  { %vm105_vm0 = vcmask 130048   ;;  %vm167_vm1 = vcmask 261120   ;;  %s2713_s30 = smov 64   ;;  %s2714_s21 = smov 32   ;;  %vm1160_vm2 = vcmask 523264   ;;  %vm1336_vm3 = vcmask 785408   ;;  %s3988_s2 = inlined_call_operand.vmem [shape: bf16[368,128], index: 2, kind: input, shape index: {}]   ;;  %s3989_s0 = inlined_call_operand.vmem [shape: bf16[64,16], index: 0, kind: input, shape index: {}]   ;;  %s3990_s3 = inlined_call_operand.vmem [shape: f32[11,128], index: 3, kind: input, shape index: {}]   ;;  %s3991_s1 = inlined_call_operand.vmem [shape: bf16[128,128], index: 1, kind: input, shape index: {}]   ;;  %s3992_s4 = inlined_call_operand.vmem [shape: f32[64,256], index: 4, kind: output, shape index: {}]  }
   0x1   :  { %v2467_v0 = vld [vmem:[%s3988_s2] sm:$0xff]  ;;  %v2464_v2 = vld [vmem:[%s3989_s0 + $0x8] sm:$0xff]  ;;  %v2465_v3 = vld [vmem:[%s3989_s0 + $0x10] sm:$0xff]  ;;  %vm1611_vm4 = vcmask 785920   ;;  %vm1482_vm5 = vcmask 523520  }
   0x2   :  { %v2463_v1 = vld [vmem:[%s3989_s0] sm:$0xff]  ;;  %125 = vmatpush.bf16.msra.mxu0 %v2467_v0  ;;  %v2466_v4 = vld [vmem:[%s3989_s0 + $0x18] sm:$0xff]  ;;  %v2469_v5 = vld [vmem:[%s3988_s2 + $0x10] sm:$0xff]  ;;  %s2712_s0 = smov 96  }
   0x3   :  { %186 = vmatpush.bf16.msra.mxu1 %v2469_v5  ;;  %2490 = vmatpush.bf16.msra.mxu2 %v2469_v5  ;;  %v2468_v6 = vld [vmem:[%s3988_s2 + $0x8] sm:$0xff]  ;;  %v2557_v8 = vld [vmem:[%s3990_s3] ss:$0 sm:$0xff]  ;;  %v2819_v62 = vld [vmem:[%s3991_s1 + $0x10] sm:$0xff] }
   0x4   :  { %v2807_v60 = vld [vmem:[%s3991_s1] sm:$0xff]  ;;  %v2813_v61 = vld [vmem:[%s3991_s1 + $0x8] sm:$0xff]  ;;  %v2825_v63 = vld [vmem:[%s3991_s1 + $0x18] sm:$0xff] }
   0x5   :  { %2291 = vmatmul.msk.bf16.vlgmr.msra.gmra.mxu0 %vm105_vm0, %v2463_v1  ;;  %v2831_v0 = vld [vmem:[%s3991_s1 + $0x20] sm:$0xff]  ;;  %v2837_v1 = vld [vmem:[%s3991_s1 + $0x28] sm:$0xff]  ;;  %v2470_v5 = vld [vmem:[%s3988_s2 + $0x18] sm:$0xff] }
   0x7   :  { %187 = vmatpush.bf16.msra.mxu1 %v2468_v6  ;;  %2491 = vmatpush.bf16.msra.mxu2 %v2468_v6 }
  0x15   :  { %2292 = vmatmul.msk.bf16.gmra.mxu0 %vm105_vm0, %v2464_v2  ;;  %v2843_v2 = vld [vmem:[%s3991_s1 + $0x30] sm:$0xff] }
  0x25   :  { %2293 = vmatmul.msk.bf16.gmra.mxu0 %vm105_vm0, %v2465_v3  ;;  %v2471_v3 = vld [vmem:[%s3988_s2 + $0x20] sm:$0xff] }
  0x26   :  { %482 = vmatpush.bf16.msrb.mxu1 %v2471_v3  ;;  %2492 = vmatpush.bf16.msra.mxu3 %v2471_v3 }
  0x2a   :  { %483 = vmatpush.bf16.msrb.mxu1 %v2470_v5  ;;  %2493 = vmatpush.bf16.msra.mxu3 %v2470_v5 }
  0x35   :  { %2294 = vmatmul.msk.bf16.gmra.mxu0 %vm105_vm0, %v2466_v4  ;;  %v2852_v4 = vld [vmem:[%s3991_s1 + $0x38] sm:$0xff] }
  0x82   :  { %v127_v7 = vpop.f32.mrf.mxu0 }
  0x83   :  { %v128_v10 = vadd.f32 %v2557_v8, %v127_v7  ;;  %v2558_v7 = vld [vmem:[%s3990_s3 + $0x1] ss:$0 sm:$0xff] }
  0x8a   :  { %v129_v9 = vpop.f32.mrf.mxu0 }
  0x8b   :  { %v130_v11 = vadd.f32 %v2557_v8, %v129_v9 }
  0x8d   :  { %v151_v12 = vpack.c.bf16 %v130_v11, %v128_v10 }
  0x8f   :  { %2303 = vmatmul.msk.bf16.vlgmr.msra.gmra.mxu1 %vm167_vm1, %v151_v12 }
  0x92   :  { %v132_v13 = vpop.f32.mrf.mxu0 }
  0x93   :  { %v133_v15 = vadd.f32 %v2557_v8, %v132_v13 }
  0x9a   :  { %v134_v14 = vpop.f32.mrf.mxu0 }
  0x9b   :  { %v135_v16 = vadd.f32 %v2557_v8, %v134_v14 }
  0x9d   :  { %v152_v17 = vpack.c.bf16 %v135_v16, %v133_v15 }
  0x9f   :  { %2304 = vmatmul.msk.bf16.vlgmr.msra.gmra.mxu2 %vm167_vm1, %v152_v17 }
  0xa2   :  { %v137_v18 = vpop.f32.mrf.mxu0 }
  0xa3   :  { %v138_v20 = vadd.f32 %v2557_v8, %v137_v18 }
  0xaa   :  { %v139_v19 = vpop.f32.mrf.mxu0 }
  0xab   :  { %v140_v21 = vadd.f32 %v2557_v8, %v139_v19 }
  0xad   :  { %v153_v22 = vpack.c.bf16 %v140_v21, %v138_v20 }
  0xaf   :  { %2305 = vmatmul.msk.bf16.gmra.mxu2 %vm167_vm1, %v153_v22 }
  0xb2   :  { %v142_v23 = vpop.f32.mrf.mxu0 }
  0xb3   :  { %v143_v25 = vadd.f32 %v2557_v8, %v142_v23 }
  0xba   :  { %v144_v24 = vpop.f32.mrf.mxu0 }
  0xbb   :  { %v145_v26 = vadd.f32 %v2557_v8, %v144_v24 }
  0xbd   :  { %v154_v27 = vpack.c.bf16 %v145_v26, %v143_v25 }
  0xbf   :  { %2306 = vmatmul.msk.bf16.gmra.mxu2 %vm167_vm1, %v154_v27 }
 0x10c   :  { %v2770_v29 = vpop.f32.mrf.mxu1 }
 0x114   :  { %v2777_v32 = vpop.f32.mrf.mxu1 }
 0x115   :  { %v2512_v34 = vpack.i.bf16 %v2777_v32, %v2770_v29  ;;  %v255_v59 = vpack.c.bf16 %v2777_v32, %v2770_v29 }
 0x122   :  { %v2768_v28 = vpop.f32.mrf.mxu2 }
 0x12a   :  { %v2772_v30 = vpop.f32.mrf.mxu2 }
 0x12b   :  { %v2507_v31 = vpack.i.bf16 %v2772_v30, %v2768_v28  ;;  %v256_v58 = vpack.c.bf16 %v2772_v30, %v2768_v28 }
 0x12d   :  { %2508 = vrot.lane.b32.xlu1 %v2507_v31, %s2712_s0 }
 0x132   :  { %v2779_v33 = vpop.f32.mrf.mxu2 }
 0x135   :  { %2513 = vrot.lane.b32.xlu1 %v2512_v34, %s2712_s0 }
 0x13a   :  { %v2784_v35 = vpop.f32.mrf.mxu2 }
 0x13b   :  { %v2502_v39 = vpack.i.bf16 %v2784_v35, %v2779_v33  ;;  %v257_v57 = vpack.c.bf16 %v2784_v35, %v2779_v33 }
 0x142   :  { %v2786_v36 = vpop.f32.mrf.mxu2 }
 0x14a   :  { %v2788_v37 = vpop.f32.mrf.mxu2 }
 0x14b   :  { %v2497_v38 = vpack.i.bf16 %v2788_v37, %v2786_v36  ;;  %v258_v56 = vpack.c.bf16 %v2788_v37, %v2786_v36 }
 0x14d   :  { %2498 = vrot.lane.b32.xlu0 %v2497_v38, %s2712_s0 }
 0x155   :  { %2503 = vrot.lane.b32.xlu0 %v2502_v39, %s2712_s0 }
 0x19f   :  { %v2509_v43 = vpop.permute.xlu1 %2508 }
 0x1a0   :  { %v2511_v49 = vunpack.i.h.bf16 %v2509_v43  ;;  %v2510_v50 = vunpack.i.l.bf16 %v2509_v43 }
 0x1a2   :  { %v260_v52 = vpack.c.bf16 %v2511_v49, %v2510_v50 }
 0x1a7   :  { %v2514_v51 = vpop.permute.xlu1 %2513 }
 0x1a8   :  { %v2516_v53 = vunpack.i.h.bf16 %v2514_v51  ;;  %v2515_v54 = vunpack.i.l.bf16 %v2514_v51 }
 0x1aa   :  { %v259_v55 = vpack.c.bf16 %v2516_v53, %v2515_v54 }
 0x1bf   :  { %v2499_v40 = vpop.permute.xlu0 %2498 }
 0x1c0   :  { %v2501_v41 = vunpack.i.h.bf16 %v2499_v40  ;;  %v2500_v42 = vunpack.i.l.bf16 %v2499_v40 }
 0x1c2   :  { %v262_v44 = vpack.c.bf16 %v2501_v41, %v2500_v42 }
 0x1c4   :  { %363 = vmatpush.bf16.msrb.mxu2 %v262_v44  ;;  %v2559_v44 = vld [vmem:[%s3990_s3 + $0x2] ss:$0 sm:$0xff] }
 0x1c7   :  { %v2504_v45 = vpop.permute.xlu0 %2503 }
 0x1c8   :  { %v2506_v46 = vunpack.i.h.bf16 %v2504_v45  ;;  %v2505_v47 = vunpack.i.l.bf16 %v2504_v45 }
 0x1ca   :  { %v261_v48 = vpack.c.bf16 %v2506_v46, %v2505_v47 }
 0x1cc   :  { %364 = vmatpush.bf16.msrb.mxu2 %v261_v48 }
 0x1d0   :  { %365 = vmatpush.bf16.msrb.mxu2 %v260_v52 }
 0x1d4   :  { %366 = vmatpush.bf16.msrb.mxu2 %v259_v55 }
 0x1d8   :  { %367 = vmatpush.bf16.msrb.mxu2 %v258_v56 }
 0x1dc   :  { %368 = vmatpush.bf16.msrb.mxu2 %v257_v57 }
 0x1e0   :  { %369 = vmatpush.bf16.msrb.mxu2 %v256_v58 }
 0x1e4   :  { %370 = vmatpush.bf16.msrb.mxu2 %v255_v59 }
 0x1e7   :  { %371 = vmatmul.bf16.vlgmr.msrb.gmra.mxu2 %v2807_v60 }
 0x1f7   :  { %376 = vmatmul.bf16.gmra.mxu2 %v2813_v61 }
 0x207   :  { %381 = vmatmul.bf16.gmra.mxu2 %v2819_v62 }
 0x217   :  { %386 = vmatmul.bf16.gmra.mxu2 %v2825_v63 }
 0x227   :  { %391 = vmatmul.bf16.gmra.mxu2 %v2831_v0 }
 0x237   :  { %396 = vmatmul.bf16.gmra.mxu2 %v2837_v1 }
 0x247   :  { %401 = vmatmul.bf16.gmra.mxu2 %v2843_v2 }
 0x257   :  { %406 = vmatmul.bf16.gmra.mxu2 %v2852_v4 }
 0x26a   :  { %v372_v6 = vpop.f32.mrf.mxu2 }
 0x26b   :  { %v373_v8 = vadd.f32 %v2558_v7, %v372_v6 }
 0x26d   :  { %v412_v11 = vmax.f32 %v373_v8, 0.0 }
 0x272   :  { %v374_v9 = vpop.f32.mrf.mxu2 }
 0x273   :  { %v375_v10 = vadd.f32 %v2558_v7, %v374_v9 }
 0x275   :  { %v413_v12 = vmax.f32 %v375_v10, 0.0 }
 0x277   :  { %v432_v13 = vpack.c.bf16 %v413_v12, %v412_v11 }
 0x279   :  { %2347 = vmatmul.msk.bf16.vlgmr.msrb.gmra.mxu1 %vm167_vm1, %v432_v13 }
 0x27a   :  { %v377_v14 = vpop.f32.mrf.mxu2 }
 0x27b   :  { %v378_v15 = vadd.f32 %v2558_v7, %v377_v14 }
 0x27d   :  { %v414_v18 = vmax.f32 %v378_v15, 0.0 }
 0x282   :  { %v379_v16 = vpop.f32.mrf.mxu2 }
 0x283   :  { %v380_v17 = vadd.f32 %v2558_v7, %v379_v16 }
 0x285   :  { %v415_v19 = vmax.f32 %v380_v17, 0.0 }
 0x287   :  { %v433_v20 = vpack.c.bf16 %v415_v19, %v414_v18 }
 0x289   :  { %2348 = vmatmul.msk.bf16.vlgmr.msra.gmra.mxu3 %vm167_vm1, %v433_v20 }
 0x28a   :  { %v382_v21 = vpop.f32.mrf.mxu2 }
 0x28b   :  { %v383_v22 = vadd.f32 %v2558_v7, %v382_v21 }
 0x28d   :  { %v416_v25 = vmax.f32 %v383_v22, 0.0 }
 0x292   :  { %v384_v23 = vpop.f32.mrf.mxu2 }
 0x293   :  { %v385_v24 = vadd.f32 %v2558_v7, %v384_v23 }
 0x295   :  { %v417_v26 = vmax.f32 %v385_v24, 0.0 }
 0x297   :  { %v434_v27 = vpack.c.bf16 %v417_v26, %v416_v25 }
 0x299   :  { %2349 = vmatmul.msk.bf16.gmra.mxu3 %vm167_vm1, %v434_v27 }
 0x29a   :  { %v387_v31 = vpop.f32.mrf.mxu2 }
 0x29b   :  { %v388_v34 = vadd.f32 %v2558_v7, %v387_v31 }
 0x29d   :  { %v418_v40 = vmax.f32 %v388_v34, 0.0 }
 0x2a2   :  { %v389_v38 = vpop.f32.mrf.mxu2 }
 0x2a3   :  { %v390_v39 = vadd.f32 %v2558_v7, %v389_v38 }
 0x2a5   :  { %v419_v41 = vmax.f32 %v390_v39, 0.0 }
 0x2a7   :  { %v435_v42 = vpack.c.bf16 %v419_v41, %v418_v40 }
 0x2a9   :  { %2350 = vmatmul.msk.bf16.gmra.mxu3 %vm167_vm1, %v435_v42  ;;  %v2560_v42 = vld [vmem:[%s3990_s3 + $0x3] ss:$0 sm:$0xff] }
 0x2aa   :  { %v392_v43 = vpop.f32.mrf.mxu2 }
 0x2ab   :  { %v393_v45 = vadd.f32 %v2559_v44, %v392_v43 }
 0x2ad   :  { %v420_v48 = vmax.f32 %v393_v45, 0.0 }
 0x2b2   :  { %v394_v46 = vpop.f32.mrf.mxu2 }
 0x2b3   :  { %v395_v47 = vadd.f32 %v2559_v44, %v394_v46 }
 0x2b5   :  { %v421_v49 = vmax.f32 %v395_v47, 0.0 }
 0x2b7   :  { %v436_v50 = vpack.c.bf16 %v421_v49, %v420_v48 }
 0x2b9   :  { %2351 = vmatmul.msk.bf16.gmra.mxu3 %vm167_vm1, %v436_v50 }
 0x2ba   :  { %v397_v51 = vpop.f32.mrf.mxu2 }
 0x2bb   :  { %v398_v52 = vadd.f32 %v2559_v44, %v397_v51 }
 0x2bd   :  { %v422_v55 = vmax.f32 %v398_v52, 0.0 }
 0x2c2   :  { %v399_v53 = vpop.f32.mrf.mxu2 }
 0x2c3   :  { %v400_v54 = vadd.f32 %v2559_v44, %v399_v53 }
 0x2c5   :  { %v423_v56 = vmax.f32 %v400_v54, 0.0 }
 0x2c7   :  { %v437_v57 = vpack.c.bf16 %v423_v56, %v422_v55 }
 0x2c9   :  { %2352 = vmatmul.msk.bf16.gmra.mxu3 %vm167_vm1, %v437_v57 }
 0x2ca   :  { %v402_v58 = vpop.f32.mrf.mxu2 }
 0x2cb   :  { %v403_v59 = vadd.f32 %v2559_v44, %v402_v58 }
 0x2cd   :  { %v424_v6 = vmax.f32 %v403_v59, 0.0 }
 0x2d2   :  { %v404_v3 = vpop.f32.mrf.mxu2 }
 0x2d3   :  { %v405_v5 = vadd.f32 %v2559_v44, %v404_v3 }
 0x2d5   :  { %v425_v7 = vmax.f32 %v405_v5, 0.0 }
 0x2d7   :  { %v438_v8 = vpack.c.bf16 %v425_v7, %v424_v6 }
 0x2d9   :  { %2353 = vmatmul.msk.bf16.gmra.mxu3 %vm167_vm1, %v438_v8 }
 0x2da   :  { %v407_v9 = vpop.f32.mrf.mxu2 }
 0x2db   :  { %v408_v10 = vadd.f32 %v2559_v44, %v407_v9 }
 0x2dd   :  { %v426_v13 = vmax.f32 %v408_v10, 0.0 }
 0x2e2   :  { %v409_v11 = vpop.f32.mrf.mxu2 }
 0x2e3   :  { %v410_v12 = vadd.f32 %v2559_v44, %v409_v11 }
 0x2e5   :  { %v427_v14 = vmax.f32 %v410_v12, 0.0 }
 0x2e7   :  { %v439_v15 = vpack.c.bf16 %v427_v14, %v426_v13 }
 0x2e9   :  { %2354 = vmatmul.msk.bf16.gmra.mxu3 %vm167_vm1, %v439_v15 }
 0x2f6   :  { %v485_v10 = vpop.f32.mrf.mxu1 }
 0x30c   :  { %v2872_v16 = vpop.f32.mrf.mxu3 }
 0x314   :  { %v2874_v17 = vpop.f32.mrf.mxu3 }
 0x31c   :  { %v2876_v18 = vpop.f32.mrf.mxu3 }
 0x324   :  { %v2878_v19 = vpop.f32.mrf.mxu3 }
 0x325   :  { %v607_v15 = vpack.c.bf16 %v2878_v19, %v2876_v18 }
 0x32c   :  { %v500_v20 = vpop.f32.mrf.mxu3 }
 0x334   :  { %v502_v21 = vpop.f32.mrf.mxu3 }
 0x335   :  { %v608_v12 = vpack.c.bf16 %v502_v21, %v500_v20  ;;  %v487_v20 = vpop.f32.mrf.mxu1 }
 0x33c   :  { %v505_v22 = vpop.f32.mrf.mxu3 }
 0x344   :  { %v507_v23 = vpop.f32.mrf.mxu3 }
 0x345   :  { %v2532_v24 = vpack.i.bf16 %v507_v23, %v505_v22  ;;  %v605_v23 = vpack.c.bf16 %v487_v20, %v485_v10 }
 0x347   :  { %2533 = vrot.lane.b32.xlu1 %v2532_v24, %s2712_s0 }
 0x34c   :  { %v510_v25 = vpop.f32.mrf.mxu3 }
 0x354   :  { %v512_v26 = vpop.f32.mrf.mxu3 }
 0x355   :  { %v2527_v27 = vpack.i.bf16 %v512_v26, %v510_v25 }
 0x357   :  { %2528 = vrot.lane.b32.xlu0 %v2527_v27, %s2712_s0 }
 0x35c   :  { %v515_v31 = vpop.f32.mrf.mxu3 }
 0x364   :  { %v517_v34 = vpop.f32.mrf.mxu3 }
 0x365   :  { %v2522_v41 = vpack.i.bf16 %v517_v34, %v515_v31 }
 0x36c   :  { %v520_v38 = vpop.f32.mrf.mxu3 }
 0x374   :  { %v522_v39 = vpop.f32.mrf.mxu3 }
 0x375   :  { %v2517_v40 = vpack.i.bf16 %v522_v39, %v520_v38 }
 0x377   :  { %2518 = vrot.lane.b32.xlu2 %v2517_v40, %s2712_s0 }
 0x37f   :  { %2523 = vrot.lane.b32.xlu2 %v2522_v41, %s2712_s0 }
 0x387   :  { %212 = vrot.lane.b32.xlu2 %v2560_v42, %s2713_s30 }
 0x3b9   :  { %v2534_v54 = vpop.permute.xlu1 %2533 }
 0x3ba   :  { %v2536_v57 = vunpack.i.h.bf16 %v2534_v54  ;;  %v2535_v58 = vunpack.i.l.bf16 %v2534_v54 }
 0x3bc   :  { %v609_v9 = vpack.c.bf16 %v2536_v57, %v2535_v58 }
 0x3c9   :  { %v2529_v47 = vpop.permute.xlu0 %2528 }
 0x3ca   :  { %v2531_v52 = vunpack.i.h.bf16 %v2529_v47  ;;  %v2530_v53 = vunpack.i.l.bf16 %v2529_v47 }
 0x3cc   :  { %v610_v55 = vpack.c.bf16 %v2531_v52, %v2530_v53 }
 0x3d1   :  { %v2519_v43 = vpop.permute.xlu2 %2518 }
 0x3d2   :  { %v2521_v44 = vunpack.i.h.bf16 %v2519_v43  ;;  %v2520_v45 = vunpack.i.l.bf16 %v2519_v43 }
 0x3d4   :  { %v612_v46 = vpack.c.bf16 %v2521_v44, %v2520_v45 }
 0x3d6   :  { %633 = vmatpush.bf16.msrb.mxu0 %v612_v46 }
 0x3d9   :  { %v2524_v48 = vpop.permute.xlu2 %2523 }
 0x3da   :  { %v2526_v49 = vunpack.i.h.bf16 %v2524_v48  ;;  %v2525_v50 = vunpack.i.l.bf16 %v2524_v48 }
 0x3dc   :  { %v611_v51 = vpack.c.bf16 %v2526_v49, %v2525_v50 }
 0x3de   :  { %634 = vmatpush.bf16.msrb.mxu0 %v611_v51 }
 0x3e1   :  { %v213_v56 = vpop.permute.xlu2 %212 }
 0x3e2   :  { %635 = vmatpush.bf16.msrb.mxu0 %v610_v55  ;;  %v217_v59 = vadd.f32 %v213_v56, %v2768_v28  ;;  %v216_v3 = vadd.f32 %v213_v56, %v2777_v32  ;;  %v215_v5 = vadd.f32 %v213_v56, %v2770_v29  ;;  %v220_v11 = vadd.f32 %v213_v56, %v2784_v35 }
 0x3e3   :  { %v219_v28 = vadd.f32 %v213_v56, %v2779_v33  ;;  %v218_v32 = vadd.f32 %v213_v56, %v2772_v30  ;;  %v222_v35 = vadd.f32 %v213_v56, %v2788_v37  ;;  %v606_v33 = vpack.c.bf16 %v2874_v17, %v2872_v16  ;;  %v2472_v37 = vld [vmem:[%s3988_s2 + $0x28] sm:$0xff]  ;;  %v2561_v17 = vld [vmem:[%s3990_s3 + $0x4] ss:$0 sm:$0xff] }
 0x3e4   :  { %v700_v6 = vmul.f32 0.15, %v217_v59  ;;  %v699_v7 = vmul.f32 0.15, %v216_v3  ;;  %v698_v8 = vmul.f32 0.15, %v215_v5  ;;  %v221_v30 = vadd.f32 %v213_v56, %v2786_v36 }
 0x3e5   :  { %v703_v29 = vmul.f32 0.15, %v220_v11  ;;  %v702_v13 = vmul.f32 0.15, %v219_v28  ;;  %v701_v14 = vmul.f32 0.15, %v218_v32 }
 0x3e6   :  { %718 = vrot.lane.b32.xlu2 %v700_v6, %s2713_s30  ;;  %716 = vrot.lane.b32.xlu1 %v699_v7, %s2713_s30  ;;  %v705_v21 = vmul.f32 0.15, %v222_v35  ;;  %v704_v22 = vmul.f32 0.15, %v221_v30  ;;  %v2473_v36 = vld [vmem:[%s3988_s2 + $0x30] sm:$0xff] }
 0x3e7   :  { %714 = vrot.lane.b32.xlu0 %v698_v8, %s2713_s30  ;;  %636 = vmatpush.bf16.msrb.mxu0 %v609_v9 }
 0x3e8   :  { %808 = vmatpush.bf16.msra.mxu1 %v2473_v36 }
 0x3eb   :  { %637 = vmatpush.bf16.msrb.mxu0 %v608_v12 }
 0x3ec   :  { %809 = vmatpush.bf16.msra.mxu1 %v2472_v37 }
 0x3ee   :  { %724 = vrot.lane.b32.xlu2 %v703_v29, %s2713_s30  ;;  %722 = vrot.lane.b32.xlu1 %v702_v13, %s2713_s30 }
 0x3ef   :  { %720 = vrot.lane.b32.xlu0 %v701_v14, %s2713_s30  ;;  %638 = vmatpush.bf16.msrb.mxu0 %v607_v15  ;;  %v2562_v15 = vld [vmem:[%s3990_s3 + $0x5] ss:$0 sm:$0xff] }
 0x3f3   :  { %639 = vmatpush.bf16.msrb.mxu0 %v606_v33 }
 0x3f6   :  { %728 = vrot.lane.b32.xlu1 %v705_v21, %s2713_s30 }
 0x3f7   :  { %726 = vrot.lane.b32.xlu0 %v704_v22, %s2713_s30  ;;  %640 = vmatpush.bf16.msrb.mxu0 %v605_v23 }
 0x3fa   :  { %641 = vmatmul.bf16.vlgmr.msrb.gmra.mxu0 %v2807_v60 }
 0x40a   :  { %646 = vmatmul.bf16.gmra.mxu0 %v2813_v61 }
 0x41a   :  { %651 = vmatmul.bf16.gmra.mxu0 %v2819_v62 }
 0x42a   :  { %656 = vmatmul.bf16.gmra.mxu0 %v2825_v63 }
 0x43a   :  { %661 = vmatmul.bf16.gmra.mxu0 %v2831_v0 }
 0x440   :  { %v719_v46 = vpop.permute.xlu2 %718 }
 0x448   :  { %v725_v57 = vpop.permute.xlu2 %724 }
 0x44a   :  { %666 = vmatmul.bf16.gmra.mxu0 %v2837_v1 }
 0x458   :  { %v717_v27 = vpop.permute.xlu1 %716 }
 0x459   :  { %v715_v31 = vpop.permute.xlu0 %714 }
 0x45a   :  { %671 = vmatmul.bf16.gmra.mxu0 %v2843_v2 }
 0x460   :  { %v723_v58 = vpop.permute.xlu1 %722 }
 0x461   :  { %v721_v47 = vpop.permute.xlu0 %720 }
 0x468   :  { %v729_v28 = vpop.permute.xlu1 %728 }
 0x469   :  { %v727_v12 = vpop.permute.xlu0 %726 }
 0x46a   :  { %676 = vmatmul.bf16.gmra.mxu0 %v2852_v4 }
 0x477   :  { %v642_v16 = vpop.f32.mrf.mxu0 }
 0x478   :  { %v2925_v18 = vadd.f32 %v2561_v17, %v642_v16 }
 0x47a   :  { %v682_v24 = vmul.f32 0.85, %v2925_v18 }
 0x47c   :  { %v738_v34 = vadd.f32 %v715_v31, %v682_v24 }
 0x47f   :  { %v644_v19 = vpop.f32.mrf.mxu0 }
 0x480   :  { %v2928_v25 = vadd.f32 %v2561_v17, %v644_v19 }
 0x482   :  { %v683_v26 = vmul.f32 0.85, %v2928_v25 }
 0x484   :  { %v739_v38 = vadd.f32 %v717_v27, %v683_v26 }
 0x486   :  { %v758_v39 = vpack.c.bf16 %v739_v38, %v738_v34 }
 0x487   :  { %v647_v40 = vpop.f32.mrf.mxu0 }
 0x488   :  { %2363 = vmatmul.msk.bf16.vlgmr.msra.gmra.mxu1 %vm167_vm1, %v758_v39  ;;  %v2932_v41 = vadd.f32 %v2561_v17, %v647_v40 }
 0x48a   :  { %v684_v44 = vmul.f32 0.85, %v2932_v41 }
 0x48c   :  { %v740_v48 = vadd.f32 %v719_v46, %v684_v44 }
 0x48f   :  { %v649_v42 = vpop.f32.mrf.mxu0 }
 0x490   :  { %v2934_v43 = vadd.f32 %v2561_v17, %v649_v42 }
 0x492   :  { %v685_v45 = vmul.f32 0.85, %v2934_v43 }
 0x494   :  { %v741_v49 = vadd.f32 %v721_v47, %v685_v45 }
 0x496   :  { %v759_v50 = vpack.c.bf16 %v741_v49, %v740_v48 }
 0x497   :  { %v652_v51 = vpop.f32.mrf.mxu0 }
 0x498   :  { %2364 = vmatmul.msk.bf16.gmra.mxu1 %vm167_vm1, %v759_v50  ;;  %v2939_v52 = vadd.f32 %v2561_v17, %v652_v51 }
 0x49a   :  { %v686_v55 = vmul.f32 0.85, %v2939_v52 }
 0x49c   :  { %v742_v59 = vadd.f32 %v723_v58, %v686_v55 }
 0x49f   :  { %v654_v53 = vpop.f32.mrf.mxu0 }
 0x4a0   :  { %v2941_v54 = vadd.f32 %v2561_v17, %v654_v53 }
 0x4a2   :  { %v687_v56 = vmul.f32 0.85, %v2941_v54 }
 0x4a4   :  { %v743_v3 = vadd.f32 %v725_v57, %v687_v56 }
 0x4a6   :  { %v760_v5 = vpack.c.bf16 %v743_v3, %v742_v59 }
 0x4a7   :  { %v657_v6 = vpop.f32.mrf.mxu0 }
 0x4a8   :  { %2365 = vmatmul.msk.bf16.gmra.mxu1 %vm167_vm1, %v760_v5  ;;  %v2946_v7 = vadd.f32 %v2561_v17, %v657_v6 }
 0x4aa   :  { %v688_v10 = vmul.f32 0.85, %v2946_v7 }
 0x4ac   :  { %v744_v32 = vadd.f32 %v727_v12, %v688_v10 }
 0x4af   :  { %v659_v8 = vpop.f32.mrf.mxu0 }
 0x4b0   :  { %v2948_v9 = vadd.f32 %v2561_v17, %v659_v8 }
 0x4b2   :  { %v689_v11 = vmul.f32 0.85, %v2948_v9 }
 0x4b4   :  { %v745_v29 = vadd.f32 %v729_v28, %v689_v11 }
 0x4b6   :  { %v761_v13 = vpack.c.bf16 %v745_v29, %v744_v32 }
 0x4b7   :  { %v662_v14 = vpop.f32.mrf.mxu0 }
 0x4b8   :  { %2366 = vmatmul.msk.bf16.gmra.mxu1 %vm167_vm1, %v761_v13  ;;  %v2956_v35 = vadd.f32 %v2562_v15, %v662_v14 }
 0x4ba   :  { %4024 = vst [vmem:[#allocation2_spill] sm:$0xff] %v2956_v35  ;;  %v690_v30 = vmul.f32 0.85, %v2956_v35 }
 0x4bc   :  { %v746_v22 = vadd.f32 %v715_v31, %v690_v30 }
 0x4bf   :  { %v664_v33 = vpop.f32.mrf.mxu0 }
 0x4c0   :  { %v2959_v20 = vadd.f32 %v2562_v15, %v664_v33 }
 0x4c2   :  { %4025 = vst [vmem:[#allocation3_spill] sm:$0xff] %v2959_v20  ;;  %v691_v21 = vmul.f32 0.85, %v2959_v20 }
 0x4c4   :  { %v747_v23 = vadd.f32 %v717_v27, %v691_v21 }
 0x4c6   :  { %v762_v36 = vpack.c.bf16 %v747_v23, %v746_v22 }
 0x4c7   :  { %v667_v37 = vpop.f32.mrf.mxu0 }
 0x4c8   :  { %2367 = vmatmul.msk.bf16.gmra.mxu1 %vm167_vm1, %v762_v36  ;;  %v2963_v16 = vadd.f32 %v2562_v15, %v667_v37 }
 0x4ca   :  { %4026 = vst [vmem:[#allocation4_spill] sm:$0xff] %v2963_v16  ;;  %v692_v19 = vmul.f32 0.85, %v2963_v16 }
 0x4cc   :  { %v748_v34 = vadd.f32 %v719_v46, %v692_v19 }
 0x4cf   :  { %v669_v17 = vpop.f32.mrf.mxu0 }
 0x4d0   :  { %v2966_v24 = vadd.f32 %v2562_v15, %v669_v17 }
 0x4d2   :  { %4027 = vst [vmem:[#allocation5_spill] sm:$0xff] %v2966_v24  ;;  %v693_v26 = vmul.f32 0.85, %v2966_v24 }
 0x4d4   :  { %v749_v38 = vadd.f32 %v721_v47, %v693_v26 }
 0x4d6   :  { %v763_v39 = vpack.c.bf16 %v749_v38, %v748_v34  ;;  %v2475_v38 = vld [vmem:[%s3988_s2 + $0x40] sm:$0xff] }
 0x4d7   :  { %v672_v40 = vpop.f32.mrf.mxu0  ;;  %980 = vmatpush.bf16.msra.mxu2 %v2475_v38 }
 0x4d8   :  { %2368 = vmatmul.msk.bf16.gmra.mxu1 %vm167_vm1, %v763_v39  ;;  %v2970_v27 = vadd.f32 %v2562_v15, %v672_v40  ;;  %v2474_v39 = vld [vmem:[%s3988_s2 + $0x38] sm:$0xff] }
 0x4da   :  { %4028 = vst [vmem:[#allocation6_spill] sm:$0xff] %v2970_v27  ;;  %v694_v42 = vmul.f32 0.85, %v2970_v27 }
 0x4db   :  { %981 = vmatpush.bf16.msra.mxu2 %v2474_v39 }
 0x4dc   :  { %v750_v48 = vadd.f32 %v723_v58, %v694_v42 }
 0x4df   :  { %v674_v31 = vpop.f32.mrf.mxu0 }
 0x4e0   :  { %v2973_v44 = vadd.f32 %v2562_v15, %v674_v31  ;;  %v2563_v31 = vld [vmem:[%s3990_s3 + $0x6] ss:$0 sm:$0xff] }
 0x4e2   :  { %4029 = vst [vmem:[#allocation7_spill] sm:$0xff] %v2973_v44  ;;  %v695_v45 = vmul.f32 0.85, %v2973_v44 }
 0x4e4   :  { %v751_v49 = vadd.f32 %v725_v57, %v695_v45 }
 0x4e6   :  { %v764_v50 = vpack.c.bf16 %v751_v49, %v750_v48 }
 0x4e7   :  { %v677_v51 = vpop.f32.mrf.mxu0 }
 0x4e8   :  { %2369 = vmatmul.msk.bf16.gmra.mxu1 %vm167_vm1, %v764_v50  ;;  %v2977_v46 = vadd.f32 %v2562_v15, %v677_v51 }
 0x4ea   :  { %4030 = vst [vmem:[#allocation8_spill] sm:$0xff] %v2977_v46  ;;  %v696_v53 = vmul.f32 0.85, %v2977_v46 }
 0x4ec   :  { %v752_v59 = vadd.f32 %v727_v12, %v696_v53 }
 0x4ef   :  { %v679_v47 = vpop.f32.mrf.mxu0 }
 0x4f0   :  { %v2980_v55 = vadd.f32 %v2562_v15, %v679_v47 }
 0x4f2   :  { %4031 = vst [vmem:[#allocation9_spill] sm:$0xff] %v2980_v55  ;;  %v697_v56 = vmul.f32 0.85, %v2980_v55 }
 0x4f4   :  { %v753_v3 = vadd.f32 %v729_v28, %v697_v56 }
 0x4f6   :  { %v765_v5 = vpack.c.bf16 %v753_v3, %v752_v59 }
 0x4f8   :  { %2370 = vmatmul.msk.bf16.gmra.mxu1 %vm167_vm1, %v765_v5 }
 0x505   :  { %v811_v58 = vpop.f32.mrf.mxu1 }
 0x50d   :  { %v813_v57 = vpop.f32.mrf.mxu1 }
 0x50e   :  { %v851_v34 = vpack.c.bf16 %v813_v57, %v811_v58 }
 0x515   :  { %v816_v6 = vpop.f32.mrf.mxu1 }
 0x51d   :  { %v818_v8 = vpop.f32.mrf.mxu1 }
 0x51e   :  { %v852_v26 = vpack.c.bf16 %v818_v8, %v816_v6 }
 0x525   :  { %v821_v10 = vpop.f32.mrf.mxu1 }
 0x52d   :  { %v823_v11 = vpop.f32.mrf.mxu1 }
 0x52e   :  { %v853_v19 = vpack.c.bf16 %v823_v11, %v821_v10 }
 0x535   :  { %v826_v32 = vpop.f32.mrf.mxu1 }
 0x53d   :  { %v828_v29 = vpop.f32.mrf.mxu1 }
 0x53e   :  { %v854_v17 = vpack.c.bf16 %v828_v29, %v826_v32 }
 0x545   :  { %v831_v13 = vpop.f32.mrf.mxu1 }
 0x54d   :  { %v833_v14 = vpop.f32.mrf.mxu1 }
 0x54e   :  { %v855_v37 = vpack.c.bf16 %v833_v14, %v831_v13 }
 0x555   :  { %v836_v33 = vpop.f32.mrf.mxu1 }
 0x55d   :  { %v838_v15 = vpop.f32.mrf.mxu1 }
 0x55e   :  { %v856_v36 = vpack.c.bf16 %v838_v15, %v836_v33 }
 0x565   :  { %v841_v30 = vpop.f32.mrf.mxu1 }
 0x56d   :  { %v843_v21 = vpop.f32.mrf.mxu1 }
 0x56e   :  { %v857_v23 = vpack.c.bf16 %v843_v21, %v841_v30 }
 0x575   :  { %v846_v22 = vpop.f32.mrf.mxu1 }
 0x57d   :  { %v848_v12 = vpop.f32.mrf.mxu1 }
 0x57e   :  { %v858_v28 = vpack.c.bf16 %v848_v12, %v846_v22 }
 0x580   :  { %861 = vmatpush.bf16.msrb.mxu3 %v858_v28 }
 0x584   :  { %862 = vmatpush.bf16.msrb.mxu3 %v857_v23 }
 0x588   :  { %863 = vmatpush.bf16.msrb.mxu3 %v856_v36 }
 0x58c   :  { %864 = vmatpush.bf16.msrb.mxu3 %v855_v37 }
 0x590   :  { %865 = vmatpush.bf16.msrb.mxu3 %v854_v17 }
 0x594   :  { %866 = vmatpush.bf16.msrb.mxu3 %v853_v19 }
 0x598   :  { %867 = vmatpush.bf16.msrb.mxu3 %v852_v26 }
 0x59c   :  { %868 = vmatpush.bf16.msrb.mxu3 %v851_v34 }
 0x59f   :  { %869 = vmatmul.bf16.vlgmr.msrb.gmra.mxu3 %v2807_v60 }
 0x5af   :  { %874 = vmatmul.bf16.gmra.mxu3 %v2813_v61 }
 0x5bf   :  { %879 = vmatmul.bf16.gmra.mxu3 %v2819_v62 }
 0x5cf   :  { %884 = vmatmul.bf16.gmra.mxu3 %v2825_v63 }
 0x5df   :  { %889 = vmatmul.bf16.gmra.mxu3 %v2831_v0 }
 0x5ef   :  { %894 = vmatmul.bf16.gmra.mxu3 %v2837_v1 }
 0x5ff   :  { %899 = vmatmul.bf16.gmra.mxu3 %v2843_v2 }
 0x60f   :  { %904 = vmatmul.bf16.gmra.mxu3 %v2852_v4 }
 0x622   :  { %v870_v40 = vpop.f32.mrf.mxu3 }
 0x623   :  { %v871_v42 = vadd.f32 %v2563_v31, %v870_v40 }
 0x625   :  { %v910_v49 = vmax.f32 %v871_v42, 0.0 }
 0x62a   :  { %v872_v45 = vpop.f32.mrf.mxu3 }
 0x62b   :  { %v873_v48 = vadd.f32 %v2563_v31, %v872_v45 }
 0x62d   :  { %v911_v50 = vmax.f32 %v873_v48, 0.0 }
 0x62f   :  { %v930_v51 = vpack.c.bf16 %v911_v50, %v910_v49 }
 0x631   :  { %2379 = vmatmul.msk.bf16.vlgmr.msra.gmra.mxu2 %vm167_vm1, %v930_v51 }
 0x632   :  { %v875_v47 = vpop.f32.mrf.mxu3 }
 0x633   :  { %v876_v53 = vadd.f32 %v2563_v31, %v875_v47 }
 0x635   :  { %v912_v3 = vmax.f32 %v876_v53, 0.0 }
 0x63a   :  { %v877_v56 = vpop.f32.mrf.mxu3 }
 0x63b   :  { %v878_v59 = vadd.f32 %v2563_v31, %v877_v56 }
 0x63d   :  { %v913_v5 = vmax.f32 %v878_v59, 0.0 }
 0x63f   :  { %v931_v58 = vpack.c.bf16 %v913_v5, %v912_v3 }
 0x641   :  { %2380 = vmatmul.msk.bf16.gmra.mxu2 %vm167_vm1, %v931_v58 }
 0x642   :  { %v880_v57 = vpop.f32.mrf.mxu3 }
 0x643   :  { %v881_v6 = vadd.f32 %v2563_v31, %v880_v57 }
 0x645   :  { %v914_v11 = vmax.f32 %v881_v6, 0.0 }
 0x64a   :  { %v882_v8 = vpop.f32.mrf.mxu3 }
 0x64b   :  { %v883_v10 = vadd.f32 %v2563_v31, %v882_v8 }
 0x64d   :  { %v915_v32 = vmax.f32 %v883_v10, 0.0 }
 0x64f   :  { %v932_v29 = vpack.c.bf16 %v915_v32, %v914_v11 }
 0x651   :  { %2381 = vmatmul.msk.bf16.gmra.mxu2 %vm167_vm1, %v932_v29 }
 0x652   :  { %v885_v13 = vpop.f32.mrf.mxu3 }
 0x653   :  { %v886_v14 = vadd.f32 %v2563_v31, %v885_v13 }
 0x655   :  { %v916_v30 = vmax.f32 %v886_v14, 0.0 }
 0x65a   :  { %v887_v33 = vpop.f32.mrf.mxu3 }
 0x65b   :  { %v888_v15 = vadd.f32 %v2563_v31, %v887_v33 }
 0x65d   :  { %v917_v21 = vmax.f32 %v888_v15, 0.0 }
 0x65f   :  { %v933_v22 = vpack.c.bf16 %v917_v21, %v916_v30 }
 0x661   :  { %2382 = vmatmul.msk.bf16.gmra.mxu2 %vm167_vm1, %v933_v22 }
 0x662   :  { %v890_v12 = vpop.f32.mrf.mxu3 }
 0x663   :  { %v891_v28 = vadd.f32 %v2563_v31, %v890_v12 }
 0x665   :  { %v918_v37 = vmax.f32 %v891_v28, 0.0 }
 0x66a   :  { %v892_v23 = vpop.f32.mrf.mxu3 }
 0x66b   :  { %v893_v36 = vadd.f32 %v2563_v31, %v892_v23 }
 0x66d   :  { %v919_v17 = vmax.f32 %v893_v36, 0.0 }
 0x66f   :  { %v934_v19 = vpack.c.bf16 %v919_v17, %v918_v37 }
 0x671   :  { %2383 = vmatmul.msk.bf16.gmra.mxu2 %vm167_vm1, %v934_v19 }
 0x672   :  { %v895_v26 = vpop.f32.mrf.mxu3 }
 0x673   :  { %v896_v34 = vadd.f32 %v2563_v31, %v895_v26 }
 0x675   :  { %v920_v40 = vmax.f32 %v896_v34, 0.0 }
 0x67a   :  { %v897_v38 = vpop.f32.mrf.mxu3 }
 0x67b   :  { %v898_v39 = vadd.f32 %v2563_v31, %v897_v38 }
 0x67d   :  { %v921_v42 = vmax.f32 %v898_v39, 0.0 }
 0x67f   :  { %v935_v45 = vpack.c.bf16 %v921_v42, %v920_v40 }
 0x681   :  { %2384 = vmatmul.msk.bf16.gmra.mxu2 %vm167_vm1, %v935_v45 }
 0x682   :  { %v900_v48 = vpop.f32.mrf.mxu3 }
 0x683   :  { %v901_v49 = vadd.f32 %v2563_v31, %v900_v48 }
 0x685   :  { %v922_v47 = vmax.f32 %v901_v49, 0.0 }
 0x68a   :  { %v902_v50 = vpop.f32.mrf.mxu3 }
 0x68b   :  { %v903_v51 = vadd.f32 %v2563_v31, %v902_v50 }
 0x68d   :  { %v923_v53 = vmax.f32 %v903_v51, 0.0 }
 0x68f   :  { %v936_v56 = vpack.c.bf16 %v923_v53, %v922_v47 }
 0x691   :  { %2385 = vmatmul.msk.bf16.gmra.mxu2 %vm167_vm1, %v936_v56 }
 0x692   :  { %v905_v59 = vpop.f32.mrf.mxu3 }
 0x693   :  { %v906_v3 = vadd.f32 %v2563_v31, %v905_v59 }
 0x695   :  { %v924_v57 = vmax.f32 %v906_v3, 0.0 }
 0x69a   :  { %v907_v5 = vpop.f32.mrf.mxu3 }
 0x69b   :  { %v908_v58 = vadd.f32 %v2563_v31, %v907_v5 }
 0x69d   :  { %v925_v6 = vmax.f32 %v908_v58, 0.0 }
 0x69f   :  { %v937_v8 = vpack.c.bf16 %v925_v6, %v924_v57 }
 0x6a1   :  { %2386 = vmatmul.msk.bf16.gmra.mxu2 %vm167_vm1, %v937_v8 }
 0x6b4   :  { %v983_v10 = vpop.f32.mrf.mxu2 }
 0x6bc   :  { %v985_v11 = vpop.f32.mrf.mxu2 }
 0x6bd   :  { %v1023_v32 = vpack.c.bf16 %v985_v11, %v983_v10  ;;  %v2479_v10 = vld [vmem:[%s3988_s2 + $0x60] sm:$0xff]  ;;  %v2478_v11 = vld [vmem:[%s3988_s2 + $0x58] sm:$0xff] }
 0x6be   :  { %1177 = vmatpush.bf16.msrb.mxu1 %v2479_v10 }
 0x6c2   :  { %1178 = vmatpush.bf16.msrb.mxu1 %v2478_v11 }
 0x6c4   :  { %v988_v29 = vpop.f32.mrf.mxu2 }
 0x6cc   :  { %v990_v13 = vpop.f32.mrf.mxu2 }
 0x6cd   :  { %v1024_v14 = vpack.c.bf16 %v990_v13, %v988_v29  ;;  %v2477_v29 = vld [vmem:[%s3988_s2 + $0x50] sm:$0xff] }
 0x6ce   :  { %1179 = vmatpush.bf16.msrb.mxu1 %v2477_v29 }
 0x6d4   :  { %v993_v33 = vpop.f32.mrf.mxu2 }
 0x6dc   :  { %v995_v15 = vpop.f32.mrf.mxu2 }
 0x6dd   :  { %v1025_v30 = vpack.c.bf16 %v995_v15, %v993_v33 }
 0x6e4   :  { %v998_v21 = vpop.f32.mrf.mxu2 }
 0x6ec   :  { %v1000_v22 = vpop.f32.mrf.mxu2 }
 0x6ed   :  { %v1026_v12 = vpack.c.bf16 %v1000_v22, %v998_v21 }
 0x6f4   :  { %v1003_v28 = vpop.f32.mrf.mxu2 }
 0x6fc   :  { %v1005_v23 = vpop.f32.mrf.mxu2 }
 0x6fd   :  { %v1027_v40 = vpack.c.bf16 %v1005_v23, %v1003_v28 }
 0x704   :  { %v1008_v31 = vpop.f32.mrf.mxu2 }
 0x70c   :  { %v1010_v36 = vpop.f32.mrf.mxu2 }
 0x70d   :  { %v1028_v39 = vpack.c.bf16 %v1010_v36, %v1008_v31 }
 0x714   :  { %v1013_v37 = vpop.f32.mrf.mxu2 }
 0x71c   :  { %v1015_v17 = vpop.f32.mrf.mxu2 }
 0x71d   :  { %v1029_v38 = vpack.c.bf16 %v1015_v17, %v1013_v37 }
 0x724   :  { %v1018_v19 = vpop.f32.mrf.mxu2 }
 0x72c   :  { %v1020_v26 = vpop.f32.mrf.mxu2 }
 0x72d   :  { %v1030_v34 = vpack.c.bf16 %v1020_v26, %v1018_v19 }
 0x72f   :  { %1033 = vmatpush.bf16.msra.mxu0 %v1030_v34 }
 0x733   :  { %1034 = vmatpush.bf16.msra.mxu0 %v1029_v38 }
 0x737   :  { %1035 = vmatpush.bf16.msra.mxu0 %v1028_v39 }
 0x73b   :  { %1036 = vmatpush.bf16.msra.mxu0 %v1027_v40 }
 0x73f   :  { %1037 = vmatpush.bf16.msra.mxu0 %v1026_v12 }
 0x743   :  { %1038 = vmatpush.bf16.msra.mxu0 %v1025_v30  ;;  %v2476_v30 = vld [vmem:[%s3988_s2 + $0x48] sm:$0xff] }
 0x744   :  { %1180 = vmatpush.bf16.msrb.mxu1 %v2476_v30 }
 0x747   :  { %1039 = vmatpush.bf16.msra.mxu0 %v1024_v14 }
 0x74b   :  { %1040 = vmatpush.bf16.msra.mxu0 %v1023_v32 }
 0x74e   :  { %1041 = vmatmul.bf16.vlgmr.msra.gmra.mxu0 %v2807_v60 }
 0x75e   :  { %1046 = vmatmul.bf16.gmra.mxu0 %v2813_v61 }
 0x76e   :  { %1051 = vmatmul.bf16.gmra.mxu0 %v2819_v62 }
 0x77e   :  { %1056 = vmatmul.bf16.gmra.mxu0 %v2825_v63 }
 0x78e   :  { %1061 = vmatmul.bf16.gmra.mxu0 %v2831_v0  ;;  %v3028_v0 = vld [vmem:[%s3990_s3 + $0x7] ss:$0 sm:$0xff] }
 0x79e   :  { %1066 = vmatmul.bf16.gmra.mxu0 %v2837_v1 }
 0x7ae   :  { %1071 = vmatmul.bf16.gmra.mxu0 %v2843_v2 }
 0x7be   :  { %1076 = vmatmul.bf16.gmra.mxu0 %v2852_v4 }
 0x7cb   :  { %v1042_v42 = vpop.f32.mrf.mxu0 }
 0x7cc   :  { %v3095_v22 = vadd.f32 %v3028_v0, %v1042_v42 }
 0x7d3   :  { %v1044_v45 = vpop.f32.mrf.mxu0 }
 0x7d4   :  { %v3098_v12 = vadd.f32 %v3028_v0, %v1044_v45 }
 0x7db   :  { %v1047_v48 = vpop.f32.mrf.mxu0 }
 0x7dc   :  { %v3106_v19 = vadd.f32 %v3028_v0, %v1047_v48 }
 0x7de   :  { %4040 = vst [vmem:[#allocation18_spill] sm:$0xff] %v3106_v19 }
 0x7e3   :  { %v1049_v49 = vpop.f32.mrf.mxu0 }
 0x7e4   :  { %v3109_v26 = vadd.f32 %v3028_v0, %v1049_v49 }
 0x7eb   :  { %v3017_v50 = vpop.f32.mrf.mxu0 }
 0x7f3   :  { %v3019_v60 = vpop.f32.mrf.mxu0 }
 0x7f4   :  { %v3122_v48 = vadd.f32 %v3028_v0, %v3019_v60 }
 0x7f6   :  { %4041 = vst [vmem:[#allocation19_spill] sm:$0xff] %v3122_v48 }
 0x7fb   :  { %v3021_v61 = vpop.f32.mrf.mxu0 }
 0x803   :  { %v3023_v62 = vpop.f32.mrf.mxu0 }
 0x804   :  { %v3135_v60 = vadd.f32 %v3028_v0, %v3023_v62 }
 0x80b   :  { %v1062_v63 = vpop.f32.mrf.mxu0 }
 0x80c   :  { %v3031_v2 = vadd.f32 %v3028_v0, %v1062_v63  ;;  %v3118_v63 = vadd.f32 %v3028_v0, %v3017_v50  ;;  %v3131_v50 = vadd.f32 %v3028_v0, %v3021_v61 }
 0x80e   :  { %4032 = vst [vmem:[#allocation10_spill] sm:$0xff] %v3031_v2 }
 0x813   :  { %v1064_v1 = vpop.f32.mrf.mxu0 }
 0x814   :  { %v3034_v4 = vadd.f32 %v3028_v0, %v1064_v1 }
 0x816   :  { %4033 = vst [vmem:[#allocation11_spill] sm:$0xff] %v3034_v4  ;;  %v2537_v51 = vpack.i.bf16 %v3034_v4, %v3031_v2 }
 0x818   :  { %2538 = vrot.lane.b32.xlu2 %v2537_v51, %s2714_s21 }
 0x81b   :  { %v1067_v47 = vpop.f32.mrf.mxu0 }
 0x81c   :  { %v3040_v56 = vadd.f32 %v3028_v0, %v1067_v47 }
 0x81e   :  { %4034 = vst [vmem:[#allocation12_spill] sm:$0xff] %v3040_v56 }
 0x823   :  { %v1069_v53 = vpop.f32.mrf.mxu0 }
 0x824   :  { %v3043_v59 = vadd.f32 %v3028_v0, %v1069_v53 }
 0x826   :  { %4035 = vst [vmem:[#allocation13_spill] sm:$0xff] %v3043_v59  ;;  %v2542_v3 = vpack.i.bf16 %v3043_v59, %v3040_v56 }
 0x828   :  { %2543 = vrot.lane.b32.xlu0 %v2542_v3, %s2714_s21 }
 0x82b   :  { %v1072_v5 = vpop.f32.mrf.mxu0 }
 0x82c   :  { %v3051_v58 = vadd.f32 %v3028_v0, %v1072_v5 }
 0x82e   :  { %4036 = vst [vmem:[#allocation14_spill] sm:$0xff] %v3051_v58 }
 0x830   :  { %1210 = vrot.lane.b32.xlu0 %v2956_v35, %s2714_s21 }
 0x833   :  { %v1074_v57 = vpop.f32.mrf.mxu0 }
 0x834   :  { %v3054_v6 = vadd.f32 %v3028_v0, %v1074_v57 }
 0x836   :  { %4037 = vst [vmem:[#allocation15_spill] sm:$0xff] %v3054_v6  ;;  %v2547_v8 = vpack.i.bf16 %v3054_v6, %v3051_v58 }
 0x838   :  { %2548 = vrot.lane.b32.xlu1 %v2547_v8, %s2714_s21  ;;  %1220 = vrot.lane.b32.xlu0 %v2973_v44, %s2714_s21 }
 0x83b   :  { %v1077_v32 = vpop.f32.mrf.mxu0 }
 0x83c   :  { %v3075_v13 = vadd.f32 %v3028_v0, %v1077_v32  ;;  %v2565_v32 = vld [vmem:[%s3990_s3 + $0x8] ss:$0 sm:$0xff] }
 0x83e   :  { %4038 = vst [vmem:[#allocation16_spill] sm:$0xff] %v3075_v13 }
 0x840   :  { %1212 = vrot.lane.b32.xlu1 %v2959_v20, %s2714_s21  ;;  %1222 = vrot.lane.b32.xlu0 %v2977_v46, %s2714_s21 }
 0x843   :  { %v1079_v14 = vpop.f32.mrf.mxu0 }
 0x844   :  { %v3078_v33 = vadd.f32 %v3028_v0, %v1079_v14 }
 0x846   :  { %4039 = vst [vmem:[#allocation17_spill] sm:$0xff] %v3078_v33  ;;  %v2552_v15 = vpack.i.bf16 %v3078_v33, %v3075_v13 }
 0x848   :  { %1214 = vrot.lane.b32.xlu1 %v2963_v16, %s2714_s21  ;;  %2553 = vrot.lane.b32.xlu2 %v2552_v15, %s2714_s21 }
 0x850   :  { %1224 = vrot.lane.b32.xlu1 %v2980_v55, %s2714_s21  ;;  %1216 = vrot.lane.b32.xlu2 %v2966_v24, %s2714_s21 }
 0x858   :  { %1218 = vrot.lane.b32.xlu2 %v2970_v27, %s2714_s21 }
 0x872   :  { %v2539_v21 = vpop.permute.xlu2 %2538 }
 0x873   :  { %v2541_v28 = vunpack.i.h.bf16 %v2539_v21  ;;  %v2540_v23 = vunpack.i.l.bf16 %v2539_v21 }
 0x875   :  { %v1114_v31 = vsel %vm167_vm1, %v3095_v22, %v2540_v23  ;;  %v1115_v36 = vsel %vm167_vm1, %v3098_v12, %v2541_v28 }
 0x876   :  { %v1130_v37 = vpack.c.bf16 %v1115_v36, %v1114_v31  ;;  %v2485_v31 = vld [vmem:[%s3988_s2 + $0x90] sm:$0xff] }
 0x877   :  { %1351 = vmatpush.bf16.msra.mxu1 %v2485_v31 }
 0x878   :  { %2403 = vmatmul.msk.bf16.vlgmr.msrb.gmra.mxu1 %vm1160_vm2, %v1130_v37  ;;  %v2484_v37 = vld [vmem:[%s3988_s2 + $0x88] sm:$0xff] }
 0x87b   :  { %1352 = vmatpush.bf16.msra.mxu1 %v2484_v37 }
 0x89a   :  { %v2544_v17 = vpop.permute.xlu0 %2543 }
 0x89b   :  { %v2546_v34 = vunpack.i.h.bf16 %v2544_v17  ;;  %v2545_v38 = vunpack.i.l.bf16 %v2544_v17 }
 0x89d   :  { %v1116_v39 = vsel %vm167_vm1, %v3106_v19, %v2545_v38  ;;  %v1117_v40 = vsel %vm167_vm1, %v3109_v26, %v2546_v34  ;;  %v2483_v34 = vld [vmem:[%s3988_s2 + $0x80] sm:$0xff] }
 0x89e   :  { %v1131_v42 = vpack.c.bf16 %v1117_v40, %v1116_v39  ;;  %1353 = vmatpush.bf16.msra.mxu1 %v2483_v34  ;;  %v2482_v39 = vld [vmem:[%s3988_s2 + $0x78] sm:$0xff] }
 0x8a0   :  { %2404 = vmatmul.msk.bf16.gmra.mxu1 %vm1160_vm2, %v1131_v42  ;;  %v2481_v42 = vld [vmem:[%s3988_s2 + $0x70] sm:$0xff] }
 0x8a2   :  { %v2554_v3 = vpop.permute.xlu2 %2553  ;;  %1354 = vmatpush.bf16.msra.mxu1 %v2482_v39 }
 0x8a3   :  { %v2556_v5 = vunpack.i.h.bf16 %v2554_v3  ;;  %v2555_v57 = vunpack.i.l.bf16 %v2554_v3 }
 0x8a5   :  { %v1120_v8 = vsel %vm167_vm1, %v3131_v50, %v2555_v57  ;;  %v1121_v10 = vsel %vm167_vm1, %v3135_v60, %v2556_v5 }
 0x8a6   :  { %v1133_v11 = vpack.c.bf16 %v1121_v10, %v1120_v8  ;;  %1355 = vmatpush.bf16.msra.mxu1 %v2481_v42 }
 0x8aa   :  { %v2549_v45 = vpop.permute.xlu1 %2548 }
 0x8ab   :  { %v2551_v49 = vunpack.i.h.bf16 %v2549_v45  ;;  %v2550_v1 = vunpack.i.l.bf16 %v2549_v45 }
 0x8ad   :  { %v1118_v51 = vsel %vm167_vm1, %v3118_v63, %v2550_v1  ;;  %v1119_v47 = vsel %vm167_vm1, %v3122_v48, %v2551_v49  ;;  %v2480_v1 = vld [vmem:[%s3988_s2 + $0x68] sm:$0xff] }
 0x8ae   :  { %v1132_v53 = vpack.c.bf16 %v1119_v47, %v1118_v51  ;;  %1356 = vmatpush.bf16.msra.mxu1 %v2480_v1  ;;  %v3171_v51 = vpop.permute.xlu0 %1210  ;;  %v3173_v47 = vpop.permute.xlu2 %1216 }
 0x8af   :  { %4042 = vst [vmem:[#allocation20_spill] sm:$0xff] %v3173_v47  ;;  %v1266_v10 = vsel %vm167_vm1, %v2925_v18, %v3171_v51 }
 0x8b0   :  { %2405 = vmatmul.msk.bf16.gmra.mxu1 %vm1160_vm2, %v1132_v53 }
 0x8b2   :  { %v3181_v57 = vpop.permute.xlu1 %1212 }
 0x8b3   :  { %4046 = vst [vmem:[#allocation24_spill] sm:$0xff] %v3181_v57 }
 0x8b6   :  { %v3175_v53 = vpop.permute.xlu0 %1220  ;;  %v3177_v3 = vpop.permute.xlu2 %1218 }
 0x8b7   :  { %4043 = vst [vmem:[#allocation21_spill] sm:$0xff] %v3175_v53  ;;  %v1271_v39 = vsel %vm167_vm1, %v2941_v54, %v3175_v53 }
 0x8b8   :  { %4044 = vst [vmem:[#allocation22_spill] sm:$0xff] %v3177_v3 }
 0x8be   :  { %v3179_v5 = vpop.permute.xlu0 %1222 }
 0x8bf   :  { %4045 = vst [vmem:[#allocation23_spill] sm:$0xff] %v3179_v5 }
 0x8c0   :  { %2406 = vmatmul.msk.bf16.gmra.mxu1 %vm1160_vm2, %v1133_v11  ;;  %v1267_v11 = vsel %vm167_vm1, %v2928_v25, %v3181_v57 }
 0x8f5   :  { %v1182_v29 = vpop.f32.mrf.mxu1 }
 0x8f6   :  { %v1183_v61 = vadd.f32 %v2565_v32, %v1182_v29 }
 0x8f8   :  { %1242 = vrot.lane.b32.xlu2 %v1183_v61, %s2713_s30 }
 0x8fd   :  { %v1184_v14 = vpop.f32.mrf.mxu1 }
 0x8fe   :  { %v1185_v62 = vadd.f32 %v2565_v32, %v1184_v14 }
 0x900   :  { %1244 = vrot.lane.b32.xlu0 %v1185_v62, %s2713_s30  ;;  %v3198_v62 = vpop.permute.xlu1 %1214 }
 0x901   :  { %4047 = vst [vmem:[#allocation25_spill] sm:$0xff] %v3198_v62 }
 0x91d   :  { %v1187_v0 = vpop.f32.mrf.mxu1 }
 0x91e   :  { %v1188_v15 = vadd.f32 %v2565_v32, %v1187_v0  ;;  %v3200_v0 = vpop.permute.xlu1 %1224 }
 0x91f   :  { %4048 = vst [vmem:[#allocation26_spill] sm:$0xff] %v3200_v0  ;;  %v1273_v1 = vsel %vm167_vm1, %v2948_v9, %v3200_v0 }
 0x920   :  { %1246 = vrot.lane.b32.xlu0 %v1188_v15, %s2713_s30 }
 0x925   :  { %v1189_v30 = vpop.f32.mrf.mxu1 }
 0x926   :  { %v1190_v21 = vadd.f32 %v2565_v32, %v1189_v30  ;;  %v1269_v30 = vsel %vm167_vm1, %v2934_v43, %v3173_v47 }
 0x928   :  { %1248 = vrot.lane.b32.xlu1 %v1190_v21, %s2713_s30  ;;  %v1268_v21 = vsel %vm167_vm1, %v2932_v41, %v3198_v62 }
 0x92d   :  { %v1192_v28 = vpop.f32.mrf.mxu1 }
 0x92e   :  { %v1193_v23 = vadd.f32 %v2565_v32, %v1192_v28 }
 0x930   :  { %1250 = vrot.lane.b32.xlu1 %v1193_v23, %s2713_s30 }
 0x935   :  { %v1194_v36 = vpop.f32.mrf.mxu1 }
 0x936   :  { %v1195_v17 = vadd.f32 %v2565_v32, %v1194_v36 }
 0x938   :  { %1252 = vrot.lane.b32.xlu2 %v1195_v17, %s2713_s30  ;;  %v1270_v17 = vsel %vm167_vm1, %v2939_v52, %v3177_v3 }
 0x93d   :  { %v1197_v38 = vpop.f32.mrf.mxu1 }
 0x93e   :  { %v1198_v40 = vadd.f32 %v2565_v32, %v1197_v38 }
 0x940   :  { %1254 = vrot.lane.b32.xlu2 %v1198_v40, %s2713_s30 }
 0x945   :  { %v1199_v45 = vpop.f32.mrf.mxu1 }
 0x946   :  { %v1200_v49 = vadd.f32 %v2565_v32, %v1199_v45 }
 0x948   :  { %1256 = vrot.lane.b32.xlu0 %v1200_v49, %s2713_s30  ;;  %v1272_v49 = vsel %vm167_vm1, %v2946_v7, %v3179_v5 }
 0x952   :  { %v3183_v8 = vpop.permute.xlu2 %1242 }
 0x953   :  { %v1274_v29 = vsel %vm1160_vm2, %v1266_v10, %v3183_v8 }
 0x972   :  { %v3191_v32 = vpop.permute.xlu0 %1244 }
 0x973   :  { %v1275_v61 = vsel %vm1160_vm2, %v1267_v11, %v3191_v32 }
 0x974   :  { %v1294_v14 = vpack.c.bf16 %v1275_v61, %v1274_v29 }
 0x976   :  { %2431 = vmatmul.msk.bf16.vlgmr.msra.gmra.mxu1 %vm1336_vm3, %v1294_v14  ;;  %v3250_v14 = vld [vmem:[%s3990_s3 + $0x9] ss:$0 sm:$0xff] }
 0x992   :  { %v3202_v15 = vpop.permute.xlu0 %1246  ;;  %v3222_v34 = vpop.permute.xlu2 %1252 }
 0x993   :  { %v1276_v23 = vsel %vm1160_vm2, %v1268_v21, %v3202_v15  ;;  %v1279_v40 = vsel %vm1160_vm2, %v1271_v39, %v3222_v34 }
 0x99a   :  { %v3210_v28 = vpop.permute.xlu1 %1248  ;;  %v3232_v45 = vpop.permute.xlu2 %1254 }
 0x99b   :  { %v1277_v31 = vsel %vm1160_vm2, %v1269_v30, %v3210_v28  ;;  %v1280_v11 = vsel %vm1160_vm2, %v1272_v49, %v3232_v45 }
 0x99c   :  { %v1295_v36 = vpack.c.bf16 %v1277_v31, %v1276_v23 }
 0x99e   :  { %2432 = vmatmul.msk.bf16.gmra.mxu1 %vm1336_vm3, %v1295_v36 }
 0x9a2   :  { %v3217_v37 = vpop.permute.xlu1 %1250 }
 0x9a3   :  { %v1278_v38 = vsel %vm1160_vm2, %v1270_v17, %v3217_v37 }
 0x9a4   :  { %v1296_v42 = vpack.c.bf16 %v1279_v40, %v1278_v38 }
 0x9ae   :  { %2433 = vmatmul.msk.bf16.gmra.mxu1 %vm1336_vm3, %v1296_v42 }
 0x9ba   :  { %v3240_v10 = vpop.permute.xlu0 %1256 }
 0x9bb   :  { %v1281_v29 = vsel %vm1160_vm2, %v1273_v1, %v3240_v10 }
 0x9bc   :  { %v1297_v61 = vpack.c.bf16 %v1281_v29, %v1280_v11 }
 0x9be   :  { %2434 = vmatmul.msk.bf16.gmra.mxu1 %vm1336_vm3, %v1297_v61 }
 0x9f3   :  { %v1358_v30 = vpop.f32.mrf.mxu1 }
 0x9f4   :  { %v1359_v21 = vadd.f32 %v3250_v14, %v1358_v30 }
 0x9f6   :  { %2568 = vtanh.f32 %v1359_v21 }
 0x9fb   :  { %v1360_v23 = vpop.f32.mrf.mxu1 }
 0x9fc   :  { %v3253_v31 = vpop.eup %2568  ;;  %v1361_v36 = vadd.f32 %v3250_v14, %v1360_v23 }
 0x9fd   :  { %v1612_v17 = vsel %vm1611_vm4, %v3253_v31, -inf  ;;  %v1483_v38 = vsel %vm1482_vm5, %v3253_v31, -inf  ;;  %v1386_v39 = vsel %vm167_vm1, %v3253_v31, -inf }
 0x9fe   :  { %2570 = vtanh.f32 %v1361_v36  ;;  %1613 = vmax.xlane.f32.xlu2 %v1612_v17  ;;  %1484 = vmax.xlane.f32.xlu0 %v1483_v38 }
 0x9ff   :  { %1387 = vmax.xlane.f32.xlu1 %v1386_v39 }
 0xa04   :  { %v3262_v40 = vpop.eup %2570 }
 0xa05   :  { %v1389_v42 = vsel %vm167_vm1, %v3262_v40, -inf  ;;  %v1615_v49 = vsel %vm1611_vm4, %v3262_v40, -inf  ;;  %v1486_v1 = vsel %vm1482_vm5, %v3262_v40, -inf }
 0xa06   :  { %1390 = vmax.xlane.f32.xlu2 %v1389_v42  ;;  %1616 = vmax.xlane.f32.xlu0 %v1615_v49 }
 0xa07   :  { %1487 = vmax.xlane.f32.xlu1 %v1486_v1 }
 0xa1b   :  { %v1363_v11 = vpop.f32.mrf.mxu1 }
 0xa1c   :  { %v1364_v29 = vadd.f32 %v3250_v14, %v1363_v11 }
 0xa1e   :  { %2572 = vtanh.f32 %v1364_v29 }
 0xa23   :  { %v1365_v61 = vpop.f32.mrf.mxu1 }
 0xa24   :  { %v3271_v30 = vpop.eup %2572  ;;  %v1366_v21 = vadd.f32 %v3250_v14, %v1365_v61 }
 0xa25   :  { %v1392_v23 = vsel %vm167_vm1, %v3271_v30, -inf  ;;  %v1618_v36 = vsel %vm1611_vm4, %v3271_v30, -inf  ;;  %v1489_v49 = vsel %vm1482_vm5, %v3271_v30, -inf }
 0xa26   :  { %2574 = vtanh.f32 %v1366_v21  ;;  %1393 = vmax.xlane.f32.xlu0 %v1392_v23  ;;  %1619 = vmax.xlane.f32.xlu1 %v1618_v36 }
 0xa2b   :  { %v1368_v17 = vpop.f32.mrf.mxu1 }
 0xa2c   :  { %v3278_v38 = vpop.eup %2574  ;;  %v1369_v39 = vadd.f32 %v3250_v14, %v1368_v17 }
 0xa2d   :  { %v1621_v42 = vsel %vm1611_vm4, %v3278_v38, -inf  ;;  %v1395_v61 = vsel %vm167_vm1, %v3278_v38, -inf  ;;  %v1492_v17 = vsel %vm1482_vm5, %v3278_v38, -inf }
 0xa2e   :  { %2576 = vtanh.f32 %v1369_v39  ;;  %1622 = vmax.xlane.f32.xlu2 %v1621_v42  ;;  %1490 = vmax.xlane.f32.xlu1 %v1489_v49 }
 0xa33   :  { %v1370_v1 = vpop.f32.mrf.mxu1 }
 0xa34   :  { %v3285_v11 = vpop.eup %2576  ;;  %v1371_v29 = vadd.f32 %v3250_v14, %v1370_v1 }
 0xa35   :  { %v1398_v21 = vsel %vm167_vm1, %v3285_v11, -inf  ;;  %v1495_v42 = vsel %vm1482_vm5, %v3285_v11, -inf }
 0xa36   :  { %2578 = vtanh.f32 %v1371_v29  ;;  %1396 = vmax.xlane.f32.xlu1 %v1395_v61  ;;  %1399 = vmax.xlane.f32.xlu2 %v1398_v21  ;;  %v1624_v61 = vsel %vm1611_vm4, %v3285_v11, -inf }
 0xa3b   :  { %v1373_v23 = vpop.f32.mrf.mxu1 }
 0xa3c   :  { %v3292_v36 = vpop.eup %2578  ;;  %v1374_v49 = vadd.f32 %v3250_v14, %v1373_v23 }
 0xa3d   :  { %v1401_v39 = vsel %vm167_vm1, %v3292_v36, -inf  ;;  %v1498_v29 = vsel %vm1482_vm5, %v3292_v36, -inf  ;;  %v1627_v21 = vsel %vm1611_vm4, %v3292_v36, -inf }
 0xa3e   :  { %1493 = vmax.xlane.f32.xlu1 %v1492_v17  ;;  %1402 = vmax.xlane.f32.xlu0 %v1401_v39  ;;  %2580 = vtanh.f32 %v1374_v49 }
 0xa3f   :  { %1496 = vmax.xlane.f32.xlu2 %v1495_v42 }
 0xa43   :  { %v1375_v1 = vpop.f32.mrf.mxu1 }
 0xa44   :  { %v1376_v17 = vadd.f32 %v3250_v14, %v1375_v1  ;;  %v3308_v39 = vpop.eup %2580 }
 0xa45   :  { %v1630_v23 = vsel %vm1611_vm4, %v3308_v39, -inf  ;;  %v1501_v42 = vsel %vm1482_vm5, %v3308_v39, -inf  ;;  %v1404_v49 = vsel %vm167_vm1, %v3308_v39, -inf }
 0xa46   :  { %1499 = vmax.xlane.f32.xlu0 %v1498_v29  ;;  %1625 = vmax.xlane.f32.xlu1 %v1624_v61  ;;  %2582 = vtanh.f32 %v1376_v17 }
 0xa47   :  { %1628 = vmax.xlane.f32.xlu2 %v1627_v21 }
 0xa4c   :  { %v3316_v29 = vpop.eup %2582 }
 0xa4d   :  { %v1633_v14 = vsel %vm1611_vm4, %v3316_v29, -inf  ;;  %v1504_v1 = vsel %vm1482_vm5, %v3316_v29, -inf  ;;  %v1407_v61 = vsel %vm167_vm1, %v3316_v29, -inf }
 0xa4e   :  { %1631 = vmax.xlane.f32.xlu0 %v1630_v23  ;;  %1502 = vmax.xlane.f32.xlu1 %v1501_v42 }
 0xa4f   :  { %1405 = vmax.xlane.f32.xlu2 %v1404_v49 }
 0xa56   :  { %1634 = vmax.xlane.f32.xlu1 %v1633_v14 }
 0xa57   :  { %1505 = vmax.xlane.f32.xlu2 %v1504_v1 }
 0xa5e   :  { %1408 = vmax.xlane.f32.xlu1 %v1407_v61 }
 0xa71   :  { %v1485_v21 = vpop.xlane.xlu0 %1484  ;;  %v1614_v17 = vpop.xlane.xlu2 %1613 }
 0xa72   :  { %v3325_v23 = vsub.f32 %v3253_v31, %v1485_v21  ;;  %v1388_v42 = vpop.xlane.xlu1 %1387  ;;  %v3328_v49 = vsub.f32 %v3253_v31, %v1614_v17 }
 0xa73   :  { %v3331_v27 = vsub.f32 %v3253_v31, %v1388_v42 }
 0xa74   :  { %v1515_v14 = vmul.f32 1.442695, %v3325_v23  ;;  %v1644_v1 = vmul.f32 1.442695, %v3328_v49 }
 0xa75   :  { %v1418_v35 = vmul.f32 1.442695, %v3331_v27 }
 0xa76   :  { %2584 = vpow2.f32 %v1515_v14 }
 0xa77   :  { %2586 = vpow2.f32 %v1418_v35 }
 0xa78   :  { %2588 = vpow2.f32 %v1644_v1 }
 0xa79   :  { %v1617_v61 = vpop.xlane.xlu0 %1616  ;;  %v1391_v46 = vpop.xlane.xlu2 %1390 }
 0xa7a   :  { %v3337_v21 = vsub.f32 %v3262_v40, %v1617_v61  ;;  %v1488_v24 = vpop.xlane.xlu1 %1487  ;;  %v3340_v17 = vsub.f32 %v3262_v40, %v1391_v46 }
 0xa7b   :  { %v3343_v31 = vsub.f32 %v3262_v40, %v1488_v24 }
 0xa7c   :  { %v2585_v42 = vpop.eup %2584  ;;  %v1646_v55 = vmul.f32 1.442695, %v3337_v21  ;;  %v1420_v20 = vmul.f32 1.442695, %v3340_v17 }
 0xa7d   :  { %v2587_v14 = vpop.eup %2586  ;;  %v1517_v35 = vmul.f32 1.442695, %v3343_v31  ;;  %1539 = vrot.lane.b32.xlu0 %v2585_v42, %s2712_s0 }
 0xa7e   :  { %v2589_v1 = vpop.eup %2588  ;;  %2590 = vpow2.f32 %v1646_v55  ;;  %v1434_v61 = vsel %vm167_vm1, %v2587_v14, 0.0 }
 0xa7f   :  { %2592 = vpow2.f32 %v1517_v35  ;;  %1668 = vrot.lane.b32.xlu2 %v2589_v1, %s2713_s30  ;;  %1435 = vadd.xlane.f32.xlu1 %v1434_v61 }
 0xa80   :  { %2594 = vpow2.f32 %v1420_v20 }
 0xa84   :  { %v2591_v24 = vpop.eup %2590 }
 0xa85   :  { %v2593_v46 = vpop.eup %2592  ;;  %1670 = vrot.lane.b32.xlu0 %v2591_v24, %s2713_s30 }
 0xa86   :  { %v2595_v40 = vpop.eup %2594 }
 0xa87   :  { %1541 = vrot.lane.b32.xlu2 %v2593_v46, %s2712_s0  ;;  %v1437_v44 = vsel %vm167_vm1, %v2595_v40, 0.0 }
 0xa88   :  { %1438 = vadd.xlane.f32.xlu1 %v1437_v44 }
 0xa99   :  { %v1620_v42 = vpop.xlane.xlu1 %1619  ;;  %v1394_v16 = vpop.xlane.xlu0 %1393 }
 0xa9a   :  { %v3355_v55 = vsub.f32 %v3271_v30, %v1620_v42  ;;  %v3359_v35 = vsub.f32 %v3271_v30, %v1394_v16 }
 0xa9c   :  { %v1648_v14 = vmul.f32 1.442695, %v3355_v55  ;;  %v1422_v20 = vmul.f32 1.442695, %v3359_v35 }
 0xa9e   :  { %2596 = vpow2.f32 %v1648_v14 }
 0xa9f   :  { %2598 = vpow2.f32 %v1422_v20 }
 0xaa1   :  { %v1491_v1 = vpop.xlane.xlu1 %1490  ;;  %v1623_v61 = vpop.xlane.xlu2 %1622 }
 0xaa2   :  { %v3363_v24 = vsub.f32 %v3271_v30, %v1491_v1  ;;  %v3367_v40 = vsub.f32 %v3278_v38, %v1623_v61 }
 0xaa4   :  { %v1519_v44 = vmul.f32 1.442695, %v3363_v24  ;;  %v2597_v46 = vpop.eup %2596  ;;  %v1650_v14 = vmul.f32 1.442695, %v3367_v40 }
 0xaa5   :  { %1672 = vrot.lane.b32.xlu1 %v2597_v46, %s2713_s30  ;;  %v2599_v33 = vpop.eup %2598 }
 0xaa6   :  { %2600 = vpow2.f32 %v1519_v44  ;;  %v1440_v30 = vsel %vm167_vm1, %v2599_v33, 0.0 }
 0xaa7   :  { %2602 = vpow2.f32 %v1650_v14 }
 0xaa9   :  { %v1397_v16 = vpop.xlane.xlu1 %1396  ;;  %v1400_v42 = vpop.xlane.xlu2 %1399 }
 0xaac   :  { %v2601_v58 = vpop.eup %2600 }
 0xaad   :  { %1543 = vrot.lane.b32.xlu0 %v2601_v58, %s2712_s0  ;;  %v2603_v46 = vpop.eup %2602 }
 0xab0   :  { %1441 = vadd.xlane.f32.xlu2 %v1440_v30 }
 0xab1   :  { %v1494_v1 = vpop.xlane.xlu1 %1493  ;;  %v3373_v20 = vpop.xlane.xlu0 %1402 }
 0xab2   :  { %v3376_v61 = vsub.f32 %v3278_v38, %v1494_v1  ;;  %v1497_v44 = vpop.xlane.xlu2 %1496 }
 0xab3   :  { %v3381_v0 = vsub.f32 %v3285_v11, %v1497_v44 }
 0xab4   :  { %4049 = vst [vmem:[#allocation27_spill] sm:$0xff] %v3376_v61  ;;  %v1521_v5 = vmul.f32 1.442695, %v3376_v61 }
 0xab5   :  { %1674 = vrot.lane.b32.xlu0 %v2603_v46, %s2713_s30  ;;  %4050 = vst [vmem:[#allocation28_spill] sm:$0xff] %v3381_v0  ;;  %v1523_v53 = vmul.f32 1.442695, %v3381_v0 }
 0xab6   :  { %2604 = vpow2.f32 %v1521_v5 }
 0xab9   :  { %v1626_v58 = vpop.xlane.xlu1 %1625  ;;  %v1500_v14 = vpop.xlane.xlu0 %1499 }
 0xaba   :  { %v3384_v33 = vsub.f32 %v3285_v11, %v1626_v58  ;;  %v1629_v1 = vpop.xlane.xlu2 %1628 }
 0xabb   :  { %v3390_v46 = vsub.f32 %v3292_v36, %v1629_v1 }
 0xabc   :  { %v2605_v30 = vpop.eup %2604  ;;  %v1652_v4 = vmul.f32 1.442695, %v3384_v33 }
 0xabd   :  { %1545 = vrot.lane.b32.xlu1 %v2605_v30, %s2712_s0  ;;  %v1654_v44 = vmul.f32 1.442695, %v3390_v46 }
 0xabe   :  { %2606 = vpow2.f32 %v1652_v4 }
 0xabf   :  { %2608 = vpow2.f32 %v1523_v53  ;;  %v3402_v53 = vsub.f32 %v3278_v38, %v1397_v16  ;;  %v3414_v16 = vsub.f32 %v3285_v11, %v1400_v42 }
 0xac0   :  { %2610 = vpow2.f32 %v1654_v44 }
 0xac1   :  { %v3392_v5 = vpop.xlane.xlu1 %1502  ;;  %v1632_v3 = vpop.xlane.xlu0 %1631  ;;  %v1424_v44 = vmul.f32 1.442695, %v3402_v53 }
 0xac2   :  { %v3397_v56 = vsub.f32 %v3308_v39, %v1632_v3 }
 0xac4   :  { %v2607_v58 = vpop.eup %2606  ;;  %v1656_v4 = vmul.f32 1.442695, %v3397_v56 }
 0xac5   :  { %1676 = vrot.lane.b32.xlu1 %v2607_v58, %s2713_s30  ;;  %v2609_v6 = vpop.eup %2608 }
 0xac6   :  { %v2611_v1 = vpop.eup %2610  ;;  %2612 = vpow2.f32 %v1656_v4  ;;  %v1426_v4 = vmul.f32 1.442695, %v3414_v16 }
 0xac7   :  { %2614 = vpow2.f32 %v1424_v44  ;;  %v1406_v44 = vpop.xlane.xlu2 %1405 }
 0xac8   :  { %1547 = vrot.lane.b32.xlu2 %v2609_v6, %s2712_s0 }
 0xac9   :  { %v1635_v30 = vpop.xlane.xlu1 %1634 }
 0xaca   :  { %v3406_v13 = vsub.f32 %v3316_v29, %v1635_v30  ;;  %v3418_v30 = vsub.f32 %v3292_v36, %v1500_v14 }
 0xacc   :  { %v1658_v3 = vmul.f32 1.442695, %v3406_v13  ;;  %v2613_v58 = vpop.eup %2612 }
 0xacd   :  { %1678 = vrot.lane.b32.xlu1 %v2611_v1, %s2713_s30  ;;  %v2615_v6 = vpop.eup %2614  ;;  %v1525_v1 = vmul.f32 1.442695, %v3418_v30 }
 0xace   :  { %2616 = vpow2.f32 %v1658_v3  ;;  %v1443_v38 = vsel %vm167_vm1, %v2615_v6, 0.0 }
 0xacf   :  { %2618 = vpow2.f32 %v1426_v4  ;;  %v1506_v6 = vpop.xlane.xlu2 %1505 }
 0xad0   :  { %2620 = vpow2.f32 %v1525_v1  ;;  %v3424_v11 = vsub.f32 %v3316_v29, %v1506_v6  ;;  %v3431_v1 = vsub.f32 %v3292_v36, %v3373_v20  ;;  %v3444_v36 = vsub.f32 %v3308_v39, %v3392_v5 }
 0xad2   :  { %4051 = vst [vmem:[#allocation29_spill] sm:$0xff] %v3424_v11  ;;  %v1529_v14 = vmul.f32 1.442695, %v3424_v11 }
 0xad3   :  { %4052 = vst [vmem:[#allocation30_spill] sm:$0xff] %v3444_v36 }
 0xad4   :  { %v2617_v47 = vpop.eup %2616  ;;  %2622 = vpow2.f32 %v1529_v14 }
 0xad5   :  { %1680 = vrot.lane.b32.xlu1 %v2613_v58, %s2713_s30  ;;  %v2619_v3 = vpop.eup %2618 }
 0xad6   :  { %v1446_v58 = vsel %vm167_vm1, %v2619_v3, 0.0  ;;  %v3433_v3 = vpop.xlane.xlu1 %1408 }
 0xad9   :  { %v1669_v42 = vpop.permute.xlu2 %1668 }
 0xadd   :  { %1682 = vrot.lane.b32.xlu1 %v2617_v47, %s2713_s30  ;;  %v2621_v47 = vpop.eup %2620 }
 0xade   :  { %v2623_v61 = vpop.eup %2622 }
 0xadf   :  { %1444 = vadd.xlane.f32.xlu0 %v1443_v38 }
 0xae1   :  { %v1542_v38 = vpop.permute.xlu2 %1541 }
 0xae2   :  { %v1566_v4 = vsel %vm167_vm1, %v1542_v38, 0.0 }
 0xaf1   :  { %1447 = vadd.xlane.f32.xlu2 %v1446_v58  ;;  %v1540_v58 = vpop.permute.xlu0 %1539 }
 0xaf2   :  { %v3436_v6 = vpop.xlane.xlu1 %1435 }
 0xaf3   :  { %1549 = vrot.lane.b32.xlu0 %v2621_v47, %s2712_s0  ;;  %v1428_v47 = vmul.f32 1.442695, %v3431_v1 }
 0xaf5   :  { %2624 = vpow2.f32 %v1428_v47  ;;  %v1527_v47 = vmul.f32 1.442695, %v3444_v36 }
 0xaf7   :  { %2626 = vpow2.f32 %v1527_v47  ;;  %v3456_v47 = vsub.f32 %v3308_v39, %v1406_v44  ;;  %v1692_v39 = vsel %vm167_vm1, %v1669_v42, 0.0 }
 0xaf9   :  { %v1671_v14 = vpop.permute.xlu0 %1670 }
 0xafb   :  { %v2625_v11 = vpop.eup %2624 }
 0xafc   :  { %v1449_v38 = vsel %vm167_vm1, %v2625_v11, 0.0 }
 0xafd   :  { %v2627_v2 = vpop.eup %2626 }
 0xb07   :  { %1567 = vadd.xlane.f32.xlu1 %v1566_v4  ;;  %v3439_v4 = vpop.xlane.xlu1 %1438 }
 0xb09   :  { %1553 = vrot.lane.b32.xlu2 %v2623_v61, %s2712_s0 }
 0xb17   :  { %v1673_v48 = vpop.permute.xlu1 %1672 }
 0xb18   :  { %v1698_v36 = vsel %vm167_vm1, %v1673_v48, 0.0 }
 0xb1d   :  { %1450 = vadd.xlane.f32.xlu0 %v1449_v38 }
 0xb1f   :  { %v1544_v61 = vpop.permute.xlu0 %1543 }
 0xb20   :  { %v1569_v59 = vsel %vm167_vm1, %v1544_v61, 0.0 }
 0xb21   :  { %1570 = vadd.xlane.f32.xlu1 %v1569_v59  ;;  %v1695_v59 = vsel %vm167_vm1, %v1671_v14, 0.0 }
 0xb23   :  { %v3446_v20 = vpop.xlane.xlu2 %1441 }
 0xb27   :  { %v1675_v62 = vpop.permute.xlu0 %1674 }
 0xb28   :  { %v1701_v0 = vsel %vm167_vm1, %v1675_v62, 0.0 }
 0xb29   :  { %1702 = vadd.xlane.f32.xlu1 %v1701_v0 }
 0xb2b   :  { %v1548_v11 = vpop.permute.xlu2 %1547 }
 0xb2c   :  { %v1575_v61 = vsel %vm167_vm1, %v1548_v11, 0.0 }
 0xb2f   :  { %v1546_v38 = vpop.permute.xlu1 %1545 }
 0xb30   :  { %v1572_v62 = vsel %vm167_vm1, %v1546_v38, 0.0 }
 0xb31   :  { %1551 = vrot.lane.b32.xlu0 %v2627_v2, %s2712_s0  ;;  %1576 = vadd.xlane.f32.xlu1 %v1575_v61  ;;  %v1430_v2 = vmul.f32 1.442695, %v3456_v47 }
 0xb32   :  { %1696 = vadd.xlane.f32.xlu2 %v1695_v59 }
 0xb33   :  { %2628 = vpow2.f32 %v1430_v2 }
 0xb37   :  { %v1677_v5 = vpop.permute.xlu1 %1676 }
 0xb3a   :  { %1699 = vadd.xlane.f32.xlu2 %v1698_v36  ;;  %v2629_v36 = vpop.eup %2628 }
 0xb3b   :  { %v1452_v38 = vsel %vm167_vm1, %v2629_v36, 0.0 }
 0xb3f   :  { %v1679_v19 = vpop.permute.xlu1 %1678 }
 0xb40   :  { %v1707_v11 = vsel %vm167_vm1, %v1679_v19, 0.0 }
 0xb42   :  { %1573 = vadd.xlane.f32.xlu2 %v1572_v62  ;;  %v1563_v62 = vsel %vm167_vm1, %v1540_v58, 0.0 }
 0xb47   :  { %v1681_v0 = vpop.permute.xlu1 %1680 }
 0xb48   :  { %v1710_v14 = vsel %vm167_vm1, %v1681_v0, 0.0  ;;  %v1704_v0 = vsel %vm167_vm1, %v1677_v5, 0.0 }
 0xb49   :  { %1711 = vadd.xlane.f32.xlu1 %v1710_v14 }
 0xb4a   :  { %1708 = vadd.xlane.f32.xlu2 %v1707_v11 }
 0xb4f   :  { %v1683_v61 = vpop.permute.xlu1 %1682 }
 0xb50   :  { %v1713_v48 = vsel %vm167_vm1, %v1683_v61, 0.0 }
 0xb51   :  { %1714 = vadd.xlane.f32.xlu1 %v1713_v48 }
 0xb52   :  { %v3463_v59 = vpop.xlane.xlu0 %1444 }
 0xb5b   :  { %1453 = vadd.xlane.f32.xlu0 %v1452_v38 }
 0xb63   :  { %1693 = vadd.xlane.f32.xlu0 %v1692_v39 }
 0xb64   :  { %v3469_v11 = vpop.xlane.xlu2 %1447 }
 0xb65   :  { %v1550_v19 = vpop.permute.xlu0 %1549 }
 0xb66   :  { %v1578_v44 = vsel %vm167_vm1, %v1550_v19, 0.0 }
 0xb67   :  { %1579 = vadd.xlane.f32.xlu2 %v1578_v44 }
 0xb6b   :  { %1564 = vadd.xlane.f32.xlu0 %v1563_v62 }
 0xb6c   :  { %v1554_v14 = vpop.permute.xlu2 %1553 }
 0xb73   :  { %1705 = vadd.xlane.f32.xlu0 %v1704_v0 }
 0xb7a   :  { %v3484_v39 = vpop.xlane.xlu1 %1567 }
 0xb90   :  { %v3480_v58 = vpop.xlane.xlu0 %1450 }
 0xb94   :  { %v3486_v44 = vpop.xlane.xlu1 %1570 }
 0xba3   :  { %v1552_v5 = vpop.permute.xlu0 %1551 }
 0xba4   :  { %v1581_v62 = vsel %vm167_vm1, %v1552_v5, 0.0 }
 0xba5   :  { %v1697_v2 = vpop.xlane.xlu2 %1696 }
 0xba6   :  { %2630 = vlog2.f32 %v1697_v2 }
 0xbac   :  { %v2631_v61 = vpop.eup %2630 }
 0xbad   :  { %v1719_v48 = vmul.f32 0.6931472, %v2631_v61 }
 0xbaf   :  { %v3472_v42 = vsub.f32 %v3337_v21, %v1719_v48  ;;  %v1700_v21 = vpop.xlane.xlu2 %1699  ;;  %v1703_v48 = vpop.xlane.xlu1 %1702 }
 0xbb1   :  { %4053 = vst [vmem:[#allocation31_spill] sm:$0xff] %v3472_v42  ;;  %v3476_v36 = vmul.f32 %v3472_v42, %v3191_v32 }
 0xbb3   :  { %1766 = vrot.lane.b32.xlu1 %v3476_v36, %s2713_s30 }
 0xbb7   :  { %v3498_v5 = vpop.xlane.xlu1 %1576 }
 0xbce   :  { %v3482_v38 = vpop.xlane.xlu0 %1453 }
 0xbd6   :  { %v1694_v19 = vpop.xlane.xlu0 %1693 }
 0xbd7   :  { %2632 = vlog2.f32 %v1694_v19  ;;  %v3496_v19 = vpop.xlane.xlu2 %1573 }
 0xbd8   :  { %2634 = vlog2.f32 %v1700_v21  ;;  %v1712_v21 = vpop.xlane.xlu1 %1711 }
 0xbdd   :  { %v2633_v0 = vpop.eup %2632  ;;  %1582 = vadd.xlane.f32.xlu1 %v1581_v62 }
 0xbde   :  { %v1717_v32 = vmul.f32 0.6931472, %v2633_v0  ;;  %v2635_v42 = vpop.eup %2634 }
 0xbdf   :  { %v1721_v57 = vmul.f32 0.6931472, %v2635_v42 }
 0xbe0   :  { %v3490_v2 = vsub.f32 %v3328_v49, %v1717_v32  ;;  %v1709_v49 = vpop.xlane.xlu2 %1708  ;;  %v3508_v32 = vsub.f32 %v3316_v29, %v3433_v3 }
 0xbe1   :  { %v3501_v62 = vsub.f32 %v3355_v55, %v1721_v57  ;;  %2636 = vlog2.f32 %v1709_v49  ;;  %v1715_v55 = vpop.xlane.xlu1 %1714 }
 0xbe2   :  { %v1748_v61 = vmul.f32 %v3490_v2, %v3183_v8  ;;  %v1432_v42 = vmul.f32 1.442695, %v3508_v32 }
 0xbe3   :  { %4054 = vst [vmem:[#allocation32_spill] sm:$0xff] %v3501_v62  ;;  %v1750_v8 = vmul.f32 %v3501_v62, %v3202_v15  ;;  %v1584_v62 = vsel %vm167_vm1, %v1554_v14, 0.0 }
 0xbe4   :  { %1804 = vrot.lane.b32.xlu2 %v1748_v61, %s2712_s0  ;;  %1764 = vrot.lane.b32.xlu0 %v1748_v61, %s2713_s30  ;;  %2638 = vpow2.f32 %v1432_v42 }
 0xbe5   :  { %2640 = vlog2.f32 %v1715_v55 }
 0xbe6   :  { %2642 = vlog2.f32 %v1703_v48 }
 0xbe7   :  { %v2637_v0 = vpop.eup %2636  ;;  %2644 = vlog2.f32 %v3439_v4 }
 0xbe8   :  { %v1727_v61 = vmul.f32 0.6931472, %v2637_v0  ;;  %2646 = vlog2.f32 %v3469_v11 }
 0xbea   :  { %v3514_v57 = vsub.f32 %v3390_v46, %v1727_v61  ;;  %v2639_v49 = vpop.eup %2638  ;;  %v1565_v61 = vpop.xlane.xlu0 %1564 }
 0xbeb   :  { %v2641_v29 = vpop.eup %2640  ;;  %v1455_v0 = vsel %vm167_vm1, %v2639_v49, 0.0 }
 0xbec   :  { %v1753_v15 = vmul.f32 %v3514_v57, %v3222_v34  ;;  %v1731_v3 = vmul.f32 0.6931472, %v2641_v29  ;;  %v2643_v42 = vpop.eup %2642 }
 0xbed   :  { %v1723_v55 = vmul.f32 0.6931472, %v2643_v42  ;;  %v2645_v49 = vpop.eup %2644 }
 0xbee   :  { %v3524_v46 = vsub.f32 %v3406_v13, %v1731_v3  ;;  %v1461_v48 = vmul.f32 0.6931472, %v2645_v49 }
 0xbef   :  { %v3534_v13 = vsub.f32 %v3367_v40, %v1723_v55 }
 0xbf0   :  { %v1755_v34 = vmul.f32 %v3524_v46, %v3240_v10  ;;  %v3541_v4 = vsub.f32 %v3340_v17, %v1461_v48 }
 0xbf1   :  { %v1751_v10 = vmul.f32 %v3534_v13, %v3210_v28 }
 0xbf2   :  { %v1706_v14 = vpop.xlane.xlu0 %1705 }
 0xbf3   :  { %2648 = vlog2.f32 %v1706_v14 }
 0xbf4   :  { %2650 = vlog2.f32 %v1712_v21 }
 0xbf5   :  { %2652 = vlog2.f32 %v3436_v6 }
 0xbf6   :  { %1808 = vrot.lane.b32.xlu1 %v1750_v8, %s2712_s0  ;;  %2654 = vlog2.f32 %v1565_v61 }
 0xbf7   :  { %2656 = vlog2.f32 %v3463_v59 }
 0xbf8   :  { %2658 = vlog2.f32 %v3482_v38 }
 0xbf9   :  { %2660 = vlog2.f32 %v3446_v20 }
 0xbfa   :  { %2662 = vlog2.f32 %v3480_v58 }
 0xbfb   :  { %2664 = vlog2.f32 %v3486_v44 }
 0xbfe   :  { %2027 = vrot.lane.b32.xlu1 %v2925_v18, %s2714_s21 }
 0xc06   :  { %1774 = vrot.lane.b32.xlu1 %v1753_v15, %s2713_s30 }
 0xc0d   :  { %1456 = vadd.xlane.f32.xlu2 %v1455_v0 }
 0xc0e   :  { %2033 = vrot.lane.b32.xlu1 %v2934_v43, %s2714_s21  ;;  %1585 = vadd.xlane.f32.xlu0 %v1584_v62  ;;  %v2647_v62 = vpop.eup %2646 }
 0xc0f   :  { %v2649_v40 = vpop.eup %2648  ;;  %v1467_v11 = vmul.f32 0.6931472, %v2647_v62 }
 0xc10   :  { %v1725_v29 = vmul.f32 0.6931472, %v2649_v40  ;;  %v2651_v17 = vpop.eup %2650 }
 0xc11   :  { %v1729_v3 = vmul.f32 0.6931472, %v2651_v17 }
 0xc12   :  { %v3555_v28 = vsub.f32 %v3384_v33, %v1725_v29 }
 0xc16   :  { %1778 = vrot.lane.b32.xlu1 %v1755_v34, %s2713_s30 }
 0xc1e   :  { %2039 = vrot.lane.b32.xlu1 %v2946_v7, %s2714_s21 }
 0xc22   :  { %1806 = vrot.lane.b32.xlu0 %v3476_v36, %s2712_s0  ;;  %v3548_v36 = vsub.f32 %v3414_v16, %v1467_v11  ;;  %v3562_v16 = vsub.f32 %v3397_v56, %v1729_v3  ;;  %v1580_v56 = vpop.xlane.xlu2 %1579 }
 0xc23   :  { %2666 = vlog2.f32 %v1580_v56 }
 0xc24   :  { %v1754_v21 = vmul.f32 %v3562_v16, %v3232_v45 }
 0xc25   :  { %1770 = vrot.lane.b32.xlu2 %v1751_v10, %s2713_s30 }
 0xc26   :  { %2117 = vrot.lane.b32.xlu1 %v3541_v4, %s2714_s21 }
 0xc2a   :  { %1768 = vrot.lane.b32.xlu0 %v1750_v8, %s2713_s30  ;;  %v1752_v8 = vmul.f32 %v3555_v28, %v3217_v37  ;;  %v2653_v37 = vpop.eup %2652 }
 0xc2b   :  { %v2655_v33 = vpop.eup %2654  ;;  %v1459_v0 = vmul.f32 0.6931472, %v2653_v37 }
 0xc2c   :  { %v1588_v42 = vmul.f32 0.6931472, %v2655_v33 }
 0xc2d   :  { %2029 = vrot.lane.b32.xlu2 %v2928_v25, %s2714_s21  ;;  %v1474_v6 = vsub.f32 %v3331_v27, %v1459_v0  ;;  %v2489_v27 = vld [vmem:[%s3988_s2 + $0xb0] sm:$0xff] }
 0xc2e   :  { %2123 = vrot.lane.b32.xlu1 %v3548_v36, %s2714_s21  ;;  %v3577_v45 = vsub.f32 %v3325_v23, %v1588_v42  ;;  %1898 = vmatpush.bf16.msra.mxu3 %v2489_v27 }
 0xc2f   :  { %v1740_v55 = vmul.f32 %v1474_v6, %v2925_v18 }
 0xc30   :  { %v1796_v61 = vmul.f32 %v3577_v45, %v3171_v51 }
 0xc32   :  { %1810 = vrot.lane.b32.xlu0 %v1751_v10, %s2712_s0 }
 0xc35   :  { %1812 = vrot.lane.b32.xlu2 %v1752_v8, %s2712_s0 }
 0xc3a   :  { %1772 = vrot.lane.b32.xlu0 %v1752_v8, %s2713_s30 }
 0xc3d   :  { %1776 = vrot.lane.b32.xlu2 %v1754_v21, %s2713_s30 }
 0xc42   :  { %1814 = vrot.lane.b32.xlu0 %v1753_v15, %s2712_s0  ;;  %v2657_v15 = vpop.eup %2656 }
 0xc43   :  { %v1465_v59 = vmul.f32 0.6931472, %v2657_v15  ;;  %v2659_v51 = vpop.eup %2658 }
 0xc44   :  { %v1471_v38 = vmul.f32 0.6931472, %v2659_v51  ;;  %v2661_v10 = vpop.eup %2660 }
 0xc45   :  { %1818 = vrot.lane.b32.xlu2 %v1755_v34, %s2712_s0  ;;  %v1805_v34 = vpop.permute.xlu2 %1804  ;;  %v3596_v18 = vsub.f32 %v3402_v53, %v1465_v59  ;;  %v1463_v40 = vmul.f32 0.6931472, %v2661_v10  ;;  %v2663_v20 = vpop.eup %2662  ;;  %v4058_v59 = vld [vmem:[#allocation28_spill] sm:$0xff] }
 0xc46   :  { %v1828_v14 = vadd.f32 %v1805_v34, %v1796_v61  ;;  %v3604_v62 = vsub.f32 %v3456_v47, %v1471_v38  ;;  %v1469_v11 = vmul.f32 0.6931472, %v2663_v20  ;;  %v2488_v47 = vld [vmem:[%s3988_s2 + $0xa8] sm:$0xff]  ;;  %v4056_v34 = vld [vmem:[#allocation18_spill] sm:$0xff]  ;;  %v4059_v38 = vld [vmem:[#allocation25_spill] sm:$0xff] }
 0xc47   :  { %v3609_v53 = vsub.f32 %v3359_v35, %v1463_v40  ;;  %1899 = vmatpush.bf16.msra.mxu3 %v2488_v47  ;;  %v2487_v35 = vld [vmem:[%s3988_s2 + $0xa0] sm:$0xff]  ;;  %v4060_v47 = vld [vmem:[#allocation19_spill] sm:$0xff] }
 0xc48   :  { %v3619_v58 = vsub.f32 %v3431_v1, %v1469_v11  ;;  %v2665_v1 = vpop.eup %2664 }
 0xc49   :  { %v1592_v29 = vmul.f32 0.6931472, %v2665_v1  ;;  %v2667_v44 = vpop.eup %2666  ;;  %v1742_v40 = vmul.f32 %v3609_v53, %v2932_v41  ;;  %v4062_v1 = vld [vmem:[#allocation27_spill] sm:$0xff] }
 0xc4a   :  { %2031 = vrot.lane.b32.xlu0 %v2932_v41, %s2714_s21  ;;  %v1743_v41 = vmul.f32 %v3596_v18, %v2934_v43  ;;  %v4066_v43 = vld [vmem:[#allocation12_spill] sm:$0xff] }
 0xc4b   :  { %1900 = vmatpush.bf16.msra.mxu3 %v2487_v35 }
 0xc4d   :  { %2037 = vrot.lane.b32.xlu2 %v2941_v54, %s2714_s21 }
 0xc52   :  { %1816 = vrot.lane.b32.xlu0 %v1754_v21, %s2712_s0 }
 0xc55   :  { %2115 = vrot.lane.b32.xlu2 %v1474_v6, %s2714_s21 }
 0xc56   :  { %v1765_v49 = vpop.permute.xlu0 %1764 }
 0xc57   :  { %v1788_v23 = vadd.f32 %v1765_v49, %v1740_v55  ;;  %v4057_v55 = vld [vmem:[#allocation10_spill] sm:$0xff] }
 0xc59   :  { %v3587_v48 = vsel %vm167_vm1, %v1788_v23, %v1828_v14 }
 0xc5a   :  { %2035 = vrot.lane.b32.xlu0 %v2939_v52, %s2714_s21 }
 0xc5d   :  { %2121 = vrot.lane.b32.xlu2 %v3596_v18, %s2714_s21 }
 0xc62   :  { %2041 = vrot.lane.b32.xlu0 %v2948_v9, %s2714_s21 }
 0xc65   :  { %2127 = vrot.lane.b32.xlu2 %v3604_v62, %s2714_s21 }
 0xc6a   :  { %2119 = vrot.lane.b32.xlu0 %v3609_v53, %s2714_s21  ;;  %v4064_v53 = vld [vmem:[#allocation20_spill] sm:$0xff] }
 0xc6d   :  { %2061 = vrot.lane.b32.xlu2 %v3098_v12, %s2713_s30  ;;  %v2486_v12 = vld [vmem:[%s3988_s2 + $0x98] sm:$0xff] }
 0xc6e   :  { %1901 = vmatpush.bf16.msra.mxu3 %v2486_v12  ;;  %v4061_v12 = vld [vmem:[#allocation13_spill] sm:$0xff] }
 0xc72   :  { %2125 = vrot.lane.b32.xlu0 %v3619_v58, %s2714_s21 }
 0xc75   :  { %2067 = vrot.lane.b32.xlu2 %v3118_v63, %s2713_s30  ;;  %v1605_v63 = vsub.f32 %v3363_v24, %v1592_v29 }
 0xc77   :  { %v1798_v10 = vmul.f32 %v1605_v63, %v4059_v38 }
 0xc7a   :  { %2059 = vrot.lane.b32.xlu0 %v3095_v22, %s2713_s30  ;;  %v1598_v22 = vmul.f32 0.6931472, %v2667_v44  ;;  %v4063_v44 = vld [vmem:[#allocation29_spill] sm:$0xff] }
 0xc7d   :  { %2073 = vrot.lane.b32.xlu2 %v3135_v60, %s2713_s30  ;;  %v1767_v60 = vpop.permute.xlu1 %1766 }
 0xc80   :  { %v1457_v17 = vpop.xlane.xlu2 %1456 }
 0xc81   :  { %2668 = vlog2.f32 %v1457_v17  ;;  %v1586_v24 = vpop.xlane.xlu0 %1585 }
 0xc82   :  { %2670 = vlog2.f32 %v3484_v39  ;;  %2065 = vrot.lane.b32.xlu0 %v3109_v26, %s2713_s30  ;;  %v3648_v26 = vsub.f32 %v3418_v30, %v1598_v22  ;;  %v1741_v30 = vmul.f32 %v3541_v4, %v2928_v25 }
 0xc83   :  { %2672 = vlog2.f32 %v3498_v5  ;;  %v4055_v5 = vld [vmem:[#allocation24_spill] sm:$0xff] }
 0xc84   :  { %2674 = vlog2.f32 %v3496_v19 }
 0xc85   :  { %2151 = vrot.lane.b32.xlu2 %v1605_v63, %s2714_s21  ;;  %2676 = vlog2.f32 %v1586_v24 }
 0xc87   :  { %v2669_v3 = vpop.eup %2668 }
 0xc88   :  { %v2671_v8 = vpop.eup %2670  ;;  %v1473_v21 = vmul.f32 0.6931472, %v2669_v3  ;;  %v1771_v37 = vpop.permute.xlu2 %1770 }
 0xc89   :  { %v1590_v39 = vmul.f32 0.6931472, %v2671_v8  ;;  %v2673_v0 = vpop.eup %2672 }
 0xc8a   :  { %v3642_v33 = vsub.f32 %v3508_v32, %v1473_v21  ;;  %2071 = vrot.lane.b32.xlu0 %v3131_v50, %s2713_s30  ;;  %v1583_v50 = vpop.xlane.xlu1 %1582  ;;  %v1596_v6 = vmul.f32 0.6931472, %v2673_v0  ;;  %v2675_v49 = vpop.eup %2674  ;;  %v1791_v21 = vadd.f32 %v1771_v37, %v1743_v41 }
 0xc8b   :  { %v1604_v56 = vsub.f32 %v3343_v31, %v1590_v39  ;;  %v1789_v31 = vadd.f32 %v1767_v60, %v1741_v30  ;;  %v2677_v23 = vpop.eup %2676  ;;  %v1594_v51 = vmul.f32 0.6931472, %v2675_v49  ;;  %2678 = vlog2.f32 %v1583_v50  ;;  %v4065_v39 = vld [vmem:[#allocation16_spill] sm:$0xff] }
 0xc8c   :  { %2129 = vrot.lane.b32.xlu1 %v3642_v33, %s2714_s21  ;;  %v1607_v14 = vsub.f32 %v4058_v59, %v1596_v6  ;;  %v1602_v20 = vmul.f32 0.6931472, %v2677_v23  ;;  %v1744_v6 = vmul.f32 %v3548_v36, %v2939_v52  ;;  %v4071_v59 = vld [vmem:[#allocation21_spill] sm:$0xff] }
 0xc8d   :  { %2157 = vrot.lane.b32.xlu2 %v3648_v26, %s2714_s21  ;;  %v1797_v42 = vmul.f32 %v1604_v56, %v4055_v5  ;;  %v1606_v29 = vsub.f32 %v4062_v1, %v1594_v51 }
 0xc8e   :  { %v1610_v3 = vsub.f32 %v4063_v44, %v1602_v20  ;;  %v4073_v20 = vld [vmem:[#allocation26_spill] sm:$0xff] }
 0xc8f   :  { %v1799_v22 = vmul.f32 %v1606_v29, %v4064_v53 }
 0xc90   :  { %v3655_v32 = vpop.permute.xlu2 %2029 }
 0xc91   :  { %v2679_v18 = vpop.eup %2678 }
 0xc92   :  { %2149 = vrot.lane.b32.xlu0 %v1604_v56, %s2714_s21  ;;  %v1809_v27 = vpop.permute.xlu1 %1808  ;;  %v1600_v37 = vmul.f32 0.6931472, %v2679_v18 }
 0xc93   :  { %v1830_v35 = vadd.f32 %v1809_v27, %v1798_v10 }
 0xc94   :  { %v1807_v15 = vpop.permute.xlu0 %1806  ;;  %2063 = vrot.lane.b32.xlu1 %v4056_v34, %s2713_s30 }
 0xc95   :  { %v1829_v61 = vadd.f32 %v1807_v15, %v1797_v42  ;;  %2083 = vrot.lane.b32.xlu2 %v4057_v55, %s2712_s0  ;;  %v4068_v15 = vld [vmem:[#allocation30_spill] sm:$0xff] }
 0xc96   :  { %v1609_v34 = vsub.f32 %v4068_v15, %v1600_v37  ;;  %v4070_v55 = vld [vmem:[#allocation22_spill] sm:$0xff]  ;;  %v4078_v37 = vld [vmem:[#allocation7_spill] sm:$0xff] }
 0xc97   :  { %v1837_v19 = vsel %vm167_vm1, %v1789_v31, %v1829_v61  ;;  %v4069_v31 = vld [vmem:[#allocation15_spill] sm:$0xff]  ;;  %v1745_v61 = vmul.f32 %v3619_v58, %v2941_v54 }
 0xc98   :  { %v1852_v25 = vpack.c.bf16 %v1837_v19, %v3587_v48  ;;  %v1813_v4 = vpop.permute.xlu2 %1812  ;;  %v1800_v19 = vmul.f32 %v1607_v14, %v4070_v55 }
 0xc9a   :  { %2155 = vrot.lane.b32.xlu0 %v1607_v14, %s2714_s21  ;;  %2451 = vmatmul.msk.bf16.vlgmr.msra.gmra.mxu3 %vm1160_vm2, %v1852_v25  ;;  %v3689_v24 = vpop.permute.xlu1 %2027  ;;  %v1801_v25 = vmul.f32 %v3648_v26, %v4071_v59  ;;  %v1832_v51 = vadd.f32 %v1813_v4, %v1800_v19  ;;  %v4072_v26 = vld [vmem:[#allocation11_spill] sm:$0xff]  ;;  %v1747_v4 = vmul.f32 %v3642_v33, %v2948_v9 }
 0xc9c   :  { %v1769_v11 = vpop.permute.xlu0 %1768  ;;  %2069 = vrot.lane.b32.xlu1 %v4060_v47, %s2713_s30  ;;  %v1746_v47 = vmul.f32 %v3604_v62, %v2946_v7  ;;  %v4076_v62 = vld [vmem:[#allocation17_spill] sm:$0xff] }
 0xc9d   :  { %v1790_v48 = vadd.f32 %v1769_v11, %v1742_v40  ;;  %2089 = vrot.lane.b32.xlu2 %v4061_v12, %s2712_s0  ;;  %v1803_v11 = vmul.f32 %v1610_v3, %v4073_v20 }
 0xc9f   :  { %v1838_v17 = vsel %vm167_vm1, %v1790_v48, %v1830_v35  ;;  %v4074_v48 = vld [vmem:[#allocation23_spill] sm:$0xff] }
 0xca0   :  { %v1777_v63 = vpop.permute.xlu2 %1776  ;;  %v1802_v12 = vmul.f32 %v1609_v34, %v4074_v48  ;;  %v2567_v48 = vld [vmem:[%s3990_s3 + $0xa] ss:$0 sm:$0xff] }
 0xca1   :  { %v1794_v44 = vadd.f32 %v1777_v63, %v1746_v47 }
 0xca2   :  { %2161 = vrot.lane.b32.xlu0 %v1610_v3, %s2714_s21  ;;  %v1775_v50 = vpop.permute.xlu1 %1774 }
 0xca3   :  { %v1793_v27 = vadd.f32 %v1775_v50, %v1745_v61 }
 0xca4   :  { %v1811_v8 = vpop.permute.xlu0 %1810  ;;  %2147 = vrot.lane.b32.xlu1 %v3577_v45, %s2714_s21  ;;  %v4067_v45 = vld [vmem:[#allocation31_spill] sm:$0xff] }
 0xca5   :  { %v1831_v60 = vadd.f32 %v1811_v8, %v1799_v22  ;;  %2095 = vrot.lane.b32.xlu2 %v4065_v39, %s2712_s0 }
 0xca7   :  { %v1839_v56 = vsel %vm167_vm1, %v1791_v21, %v1831_v60 }
 0xca8   :  { %v1853_v0 = vpack.c.bf16 %v1839_v56, %v1838_v17  ;;  %v1819_v30 = vpop.permute.xlu2 %1818 }
 0xca9   :  { %v1835_v35 = vadd.f32 %v1819_v30, %v1803_v11 }
 0xcaa   :  { %2087 = vrot.lane.b32.xlu0 %v4066_v43, %s2712_s0  ;;  %2452 = vmatmul.msk.bf16.gmra.mxu3 %vm1160_vm2, %v1853_v0  ;;  %v3715_v54 = vpop.permute.xlu1 %2033  ;;  %v4077_v0 = vld [vmem:[#allocation4_spill] sm:$0xff] }
 0xcac   :  { %v1773_v5 = vpop.permute.xlu0 %1772  ;;  %2153 = vrot.lane.b32.xlu1 %v1606_v29, %s2714_s21  ;;  %v4075_v29 = vld [vmem:[#allocation14_spill] sm:$0xff] }
 0xcad   :  { %2181 = vrot.lane.b32.xlu2 %v4067_v45, %s2714_s21  ;;  %v1792_v49 = vadd.f32 %v1773_v5, %v1744_v6 }
 0xcaf   :  { %v1840_v36 = vsel %vm167_vm1, %v1792_v49, %v1832_v51 }
 0xcb0   :  { %v3698_v42 = vpop.permute.xlu2 %2037 }
 0xcb2   :  { %2093 = vrot.lane.b32.xlu0 %v4069_v31, %s2712_s0 }
 0xcb4   :  { %v1815_v23 = vpop.permute.xlu0 %1814  ;;  %2159 = vrot.lane.b32.xlu1 %v1609_v34, %s2714_s21 }
 0xcb5   :  { %v1833_v52 = vadd.f32 %v1815_v23, %v1801_v25 }
 0xcb7   :  { %v1841_v38 = vsel %vm167_vm1, %v1793_v27, %v1833_v52  ;;  %v4079_v52 = vld [vmem:[#allocation3_spill] sm:$0xff] }
 0xcb8   :  { %v1854_v10 = vpack.c.bf16 %v1841_v38, %v1840_v36  ;;  %v3713_v40 = vpop.permute.xlu2 %2115 }
 0xcba   :  { %2179 = vrot.lane.b32.xlu0 %v3490_v2, %s2714_s21  ;;  %2453 = vmatmul.msk.bf16.gmra.mxu3 %vm1160_vm2, %v1854_v10  ;;  %v1779_v2 = vpop.permute.xlu1 %1778 }
 0xcbb   :  { %v1795_v17 = vadd.f32 %v1779_v2, %v1747_v4  ;;  %v4080_v4 = vld [vmem:[#allocation9_spill] sm:$0xff] }
 0xcbc   :  { %v3720_v58 = vpop.permute.xlu0 %2031  ;;  %2085 = vrot.lane.b32.xlu1 %v4072_v26, %s2712_s0 }
 0xcbd   :  { %v1843_v53 = vsel %vm167_vm1, %v1795_v17, %v1835_v35 }
 0xcc0   :  { %v2122_v14 = vpop.permute.xlu2 %2121 }
 0xcc2   :  { %v3747_v39 = vpop.permute.xlu1 %2039 }
 0xcc4   :  { %v1817_v1 = vpop.permute.xlu0 %1816  ;;  %2091 = vrot.lane.b32.xlu1 %v4075_v29, %s2712_s0 }
 0xcc5   :  { %v1834_v41 = vadd.f32 %v1817_v1, %v1802_v12  ;;  %v4081_v1 = vld [vmem:[#allocation5_spill] sm:$0xff] }
 0xcc6   :  { %v2230_v29 = vsel %vm167_vm1, %v4081_v1, %v2122_v14 }
 0xcc7   :  { %v1842_v9 = vsel %vm167_vm1, %v1794_v44, %v1834_v41 }
 0xcc8   :  { %v1855_v33 = vpack.c.bf16 %v1843_v53, %v1842_v9  ;;  %v2128_v3 = vpop.permute.xlu2 %2127 }
 0xcca   :  { %2454 = vmatmul.msk.bf16.gmra.mxu3 %vm1160_vm2, %v1855_v33  ;;  %v2118_v5 = vpop.permute.xlu1 %2117 }
 0xccb   :  { %v2228_v36 = vsel %vm167_vm1, %v4079_v52, %v2118_v5 }
 0xccc   :  { %v3735_v7 = vpop.permute.xlu0 %2035  ;;  %2097 = vrot.lane.b32.xlu1 %v4076_v62, %s2712_s0  ;;  %v4082_v62 = vld [vmem:[#allocation8_spill] sm:$0xff] }
 0xcd0   :  { %v3739_v22 = vpop.permute.xlu2 %2061 }
 0xcd2   :  { %v3763_v31 = vpop.permute.xlu1 %2123 }
 0xcd4   :  { %v3741_v8 = vpop.permute.xlu0 %2041 }
 0xcd8   :  { %v3743_v21 = vpop.permute.xlu2 %2067 }
 0xcdc   :  { %v2120_v63 = vpop.permute.xlu0 %2119 }
 0xcdd   :  { %v2229_v30 = vsel %vm167_vm1, %v4077_v0, %v2120_v63  ;;  %v2233_v63 = vsel %vm167_vm1, %v4082_v62, %v2128_v3 }
 0xce0   :  { %v3745_v60 = vpop.permute.xlu2 %2073 }
 0xce4   :  { %v2126_v56 = vpop.permute.xlu0 %2125 }
 0xce5   :  { %v2232_v50 = vsel %vm167_vm1, %v4078_v37, %v2126_v56 }
 0xce8   :  { %v2152_v43 = vpop.permute.xlu2 %2151 }
 0xce9   :  { %v3752_v18 = vsel %vm1160_vm2, %v2229_v30, %v2152_v43  ;;  %v4083_v43 = vld [vmem:[#allocation2_spill] sm:$0xff] }
 0xcea   :  { %v2227_v5 = vsel %vm167_vm1, %v4083_v43, %v3713_v40 }
 0xcec   :  { %v3754_v45 = vpop.permute.xlu0 %2059 }
 0xcf0   :  { %v2158_v6 = vpop.permute.xlu2 %2157 }
 0xcf1   :  { %v3759_v15 = vsel %vm1160_vm2, %v2232_v50, %v2158_v6 }
 0xcf4   :  { %v3761_v34 = vpop.permute.xlu0 %2065 }
 0xcf8   :  { %v3765_v61 = vpop.permute.xlu2 %2083 }
 0xcfc   :  { %v3767_v55 = vpop.permute.xlu0 %2071 }
 0xcfe   :  { %v2130_v19 = vpop.permute.xlu1 %2129 }
 0xcff   :  { %v2234_v20 = vsel %vm167_vm1, %v4080_v4, %v2130_v19 }
 0xd00   :  { %v3769_v49 = vpop.permute.xlu2 %2089 }
 0xd04   :  { %v2150_v59 = vpop.permute.xlu0 %2149 }
 0xd05   :  { %v2236_v38 = vsel %vm1160_vm2, %v2228_v36, %v2150_v59 }
 0xd06   :  { %v3771_v25 = vpop.permute.xlu1 %2063 }
 0xd08   :  { %v3773_v23 = vpop.permute.xlu2 %2095 }
 0xd0c   :  { %v3775_v27 = vpop.permute.xlu0 %2155 }
 0xd0e   :  { %v3777_v51 = vpop.permute.xlu1 %2069 }
 0xd10   :  { %v2182_v10 = vpop.permute.xlu2 %2181 }
 0xd11   :  { %v2244_v26 = vsel %vm1336_vm3, %v2236_v38, %v2182_v10 }
 0xd12   :  { %2254 = vst [vmem:[%s3992_s4 + $0x18] sm:$0xff] %v2244_v26 }
 0xd14   :  { %v2162_v11 = vpop.permute.xlu0 %2161 }
 0xd15   :  { %v3789_v47 = vsel %vm1160_vm2, %v2234_v20, %v2162_v11 }
 0xd16   :  { %v2148_v35 = vpop.permute.xlu1 %2147 }
 0xd17   :  { %v2235_v37 = vsel %vm1160_vm2, %v2227_v5, %v2148_v35 }
 0xd1c   :  { %v3794_v12 = vpop.permute.xlu0 %2087 }
 0xd1d   :  { %v1903_v2 = vpop.f32.mrf.mxu3 }
 0xd1e   :  { %v1904_v17 = vadd.f32 %v2567_v48, %v1903_v2  ;;  %v2154_v44 = vpop.permute.xlu1 %2153 }
 0xd1f   :  { %v3799_v41 = vsel %vm1160_vm2, %v2230_v29, %v2154_v44 }
 0xd20   :  { %v1923_v53 = vsel %vm167_vm1, %v1904_v17, -inf }
 0xd21   :  { %1924 = vmax.xlane.f32.xlu0 %v1923_v53 }
 0xd24   :  { %v3802_v9 = vpop.permute.xlu0 %2093 }
 0xd25   :  { %v1905_v33 = vpop.f32.mrf.mxu3 }
 0xd26   :  { %v1906_v56 = vadd.f32 %v2567_v48, %v1905_v33  ;;  %v2160_v0 = vpop.permute.xlu1 %2159  ;;  %v4084_v33 = vld [vmem:[#allocation32_spill] sm:$0xff] }
 0xd27   :  { %v3807_v30 = vsel %vm1160_vm2, %v2233_v63, %v2160_v0 }
 0xd28   :  { %v1926_v14 = vsel %vm167_vm1, %v1906_v56, -inf }
 0xd29   :  { %1927 = vmax.xlane.f32.xlu1 %v1926_v14 }
 0xd2c   :  { %v2180_v50 = vpop.permute.xlu0 %2179 }
 0xd2d   :  { %v2243_v6 = vsel %vm1336_vm3, %v2235_v37, %v2180_v50  ;;  %v1908_v19 = vpop.f32.mrf.mxu3 }
 0xd2e   :  { %2252 = vst [vmem:[%s3992_s4 + $0x8] sm:$0xff] %v2243_v6  ;;  %v1909_v3 = vadd.f32 %v2567_v48, %v1908_v19  ;;  %v3830_v62 = vpop.permute.xlu1 %2085 }
 0xd30   :  { %v1929_v59 = vsel %vm167_vm1, %v1909_v3, -inf }
 0xd31   :  { %1930 = vmax.xlane.f32.xlu2 %v1929_v59 }
 0xd35   :  { %v1910_v52 = vpop.f32.mrf.mxu3 }
 0xd36   :  { %v1911_v36 = vadd.f32 %v2567_v48, %v1910_v52  ;;  %v3832_v63 = vpop.permute.xlu1 %2091 }
 0xd38   :  { %v1932_v38 = vsel %vm167_vm1, %v1911_v36, -inf }
 0xd39   :  { %1933 = vmax.xlane.f32.xlu0 %v1932_v38 }
 0xd3d   :  { %v1913_v40 = vpop.f32.mrf.mxu3 }
 0xd3e   :  { %v1914_v10 = vadd.f32 %v2567_v48, %v1913_v40  ;;  %v3834_v0 = vpop.permute.xlu1 %2097 }
 0xd40   :  { %v1935_v26 = vsel %vm167_vm1, %v1914_v10, -inf }
 0xd41   :  { %1936 = vmax.xlane.f32.xlu1 %v1935_v26 }
 0xd45   :  { %v1915_v4 = vpop.f32.mrf.mxu3 }
 0xd46   :  { %v1916_v20 = vadd.f32 %v2567_v48, %v1915_v4 }
 0xd48   :  { %v1938_v11 = vsel %vm167_vm1, %v1916_v20, -inf }
 0xd49   :  { %1939 = vmax.xlane.f32.xlu2 %v1938_v11 }
 0xd4d   :  { %v1918_v35 = vpop.f32.mrf.mxu3 }
 0xd4e   :  { %v1919_v2 = vadd.f32 %v2567_v48, %v1918_v35 }
 0xd50   :  { %v1941_v1 = vsel %vm167_vm1, %v1919_v2, -inf }
 0xd51   :  { %1942 = vmax.xlane.f32.xlu0 %v1941_v1 }
 0xd55   :  { %v1920_v29 = vpop.f32.mrf.mxu3 }
 0xd56   :  { %v1921_v44 = vadd.f32 %v2567_v48, %v1920_v29 }
 0xd58   :  { %v1944_v53 = vsel %vm167_vm1, %v1921_v44, -inf }
 0xd59   :  { %1945 = vmax.xlane.f32.xlu1 %v1944_v53 }
 0xd61   :  { %2187 = vrot.lane.b32.xlu2 %v3555_v28, %s2714_s21 }
 0xd65   :  { %2185 = vrot.lane.b32.xlu0 %v3534_v13, %s2714_s21 }
 0xd72   :  { %2183 = vrot.lane.b32.xlu1 %v4084_v33, %s2714_s21 }
 0xd94   :  { %v1925_v14 = vpop.xlane.xlu0 %1924 }
 0xd95   :  { %v3836_v48 = vsub.f32 %v1904_v17, %v1925_v14 }
 0xd97   :  { %v1955_v43 = vmul.f32 1.442695, %v3836_v48 }
 0xd99   :  { %2680 = vpow2.f32 %v1955_v43 }
 0xd9c   :  { %v1928_v5 = vpop.xlane.xlu1 %1927 }
 0xd9d   :  { %v3839_v28 = vsub.f32 %v1906_v56, %v1928_v5 }
 0xd9f   :  { %v2681_v37 = vpop.eup %2680  ;;  %v1957_v13 = vmul.f32 1.442695, %v3839_v28 }
 0xda0   :  { %v1971_v50 = vsel %vm167_vm1, %v2681_v37, 0.0 }
 0xda1   :  { %2682 = vpow2.f32 %v1957_v13  ;;  %1972 = vadd.xlane.f32.xlu2 %v1971_v50 }
 0xda4   :  { %v1931_v6 = vpop.xlane.xlu2 %1930 }
 0xda5   :  { %v3843_v19 = vsub.f32 %v1909_v3, %v1931_v6 }
 0xda7   :  { %v2683_v59 = vpop.eup %2682  ;;  %v1959_v17 = vmul.f32 1.442695, %v3843_v19 }
 0xda8   :  { %v1974_v52 = vsel %vm167_vm1, %v2683_v59, 0.0 }
 0xda9   :  { %2684 = vpow2.f32 %v1959_v17  ;;  %1975 = vadd.xlane.f32.xlu0 %v1974_v52 }
 0xdac   :  { %v1934_v38 = vpop.xlane.xlu0 %1933 }
 0xdad   :  { %v3847_v56 = vsub.f32 %v1911_v36, %v1934_v38 }
 0xdaf   :  { %v2685_v40 = vpop.eup %2684  ;;  %v1961_v26 = vmul.f32 1.442695, %v3847_v56 }
 0xdb0   :  { %v1977_v4 = vsel %vm167_vm1, %v2685_v40, 0.0 }
 0xdb1   :  { %2686 = vpow2.f32 %v1961_v26  ;;  %1978 = vadd.xlane.f32.xlu1 %v1977_v4 }
 0xdb4   :  { %v1937_v11 = vpop.xlane.xlu1 %1936 }
 0xdb5   :  { %v3851_v3 = vsub.f32 %v1914_v10, %v1937_v11  ;;  %v4085_v10 = vld [vmem:[#allocation6_spill] sm:$0xff] }
 0xdb6   :  { %v2231_v5 = vsel %vm167_vm1, %v4085_v10, %v3763_v31 }
 0xdb7   :  { %v2687_v35 = vpop.eup %2686  ;;  %v1963_v1 = vmul.f32 1.442695, %v3851_v3  ;;  %v2239_v37 = vsel %vm1160_vm2, %v2231_v5, %v3775_v27 }
 0xdb8   :  { %v1980_v29 = vsel %vm167_vm1, %v2687_v35, 0.0 }
 0xdb9   :  { %2688 = vpow2.f32 %v1963_v1  ;;  %1981 = vadd.xlane.f32.xlu2 %v1980_v29 }
 0xdbc   :  { %v1940_v53 = vpop.xlane.xlu2 %1939 }
 0xdbd   :  { %v3855_v36 = vsub.f32 %v1916_v20, %v1940_v53 }
 0xdbf   :  { %v2689_v33 = vpop.eup %2688  ;;  %v1965_v14 = vmul.f32 1.442695, %v3855_v36 }
 0xdc0   :  { %v1983_v43 = vsel %vm167_vm1, %v2689_v33, 0.0 }
 0xdc1   :  { %2690 = vpow2.f32 %v1965_v14  ;;  %1984 = vadd.xlane.f32.xlu0 %v1983_v43 }
 0xdc4   :  { %v1943_v13 = vpop.xlane.xlu0 %1942  ;;  %v2188_v50 = vpop.permute.xlu2 %2187 }
 0xdc5   :  { %v3864_v6 = vsub.f32 %v1919_v2, %v1943_v13  ;;  %v2247_v20 = vsel %vm1336_vm3, %v2239_v37, %v2188_v50 }
 0xdc6   :  { %2260 = vst [vmem:[%s3992_s4 + $0x48] sm:$0xff] %v2247_v20 }
 0xdc7   :  { %v2691_v59 = vpop.eup %2690  ;;  %v1967_v17 = vmul.f32 1.442695, %v3864_v6 }
 0xdc8   :  { %v1986_v52 = vsel %vm167_vm1, %v2691_v59, 0.0 }
 0xdc9   :  { %2692 = vpow2.f32 %v1967_v17  ;;  %1987 = vadd.xlane.f32.xlu1 %v1986_v52 }
 0xdcc   :  { %v1946_v31 = vpop.xlane.xlu1 %1945 }
 0xdcd   :  { %v3872_v38 = vsub.f32 %v1921_v44, %v1946_v31 }
 0xdcf   :  { %v2693_v27 = vpop.eup %2692  ;;  %v1969_v2 = vmul.f32 1.442695, %v3872_v38 }
 0xdd0   :  { %v1989_v40 = vsel %vm167_vm1, %v2693_v27, 0.0 }
 0xdd1   :  { %2694 = vpow2.f32 %v1969_v2  ;;  %1990 = vadd.xlane.f32.xlu2 %v1989_v40 }
 0xdd7   :  { %v2695_v26 = vpop.eup %2694  ;;  %v2186_v4 = vpop.permute.xlu0 %2185 }
 0xdd8   :  { %v2246_v11 = vsel %vm1336_vm3, %v3799_v41, %v2186_v4  ;;  %v1992_v35 = vsel %vm167_vm1, %v2695_v26, 0.0 }
 0xdd9   :  { %2258 = vst [vmem:[%s3992_s4 + $0x38] sm:$0xff] %v2246_v11  ;;  %1993 = vadd.xlane.f32.xlu0 %v1992_v35 }
 0xde2   :  { %2189 = vrot.lane.b32.xlu1 %v3514_v57, %s2714_s21 }
 0xde4   :  { %v2184_v44 = vpop.permute.xlu1 %2183 }
 0xde5   :  { %v2245_v1 = vsel %vm1336_vm3, %v3752_v18, %v2184_v44 }
 0xde6   :  { %2256 = vst [vmem:[%s3992_s4 + $0x28] sm:$0xff] %v2245_v1 }
 0xde9   :  { %2193 = vrot.lane.b32.xlu2 %v3524_v46, %s2714_s21 }
 0xded   :  { %2191 = vrot.lane.b32.xlu0 %v3562_v16, %s2714_s21 }
 0xe14   :  { %v1973_v41 = vpop.xlane.xlu2 %1972 }
 0xe15   :  { %2696 = vlog2.f32 %v1973_v41 }
 0xe1b   :  { %v2697_v29 = vpop.eup %2696 }
 0xe1c   :  { %v1996_v53 = vmul.f32 0.6931472, %v2697_v29  ;;  %v1976_v33 = vpop.xlane.xlu0 %1975 }
 0xe1d   :  { %2698 = vlog2.f32 %v1976_v33 }
 0xe1e   :  { %v2011_v57 = vsub.f32 %v3836_v48, %v1996_v53 }
 0xe20   :  { %v2203_v18 = vsel %vm167_vm1, %v2011_v57, %v3689_v24 }
 0xe21   :  { %v2211_v14 = vsel %vm1160_vm2, %v2203_v18, %v3754_v45 }
 0xe22   :  { %v2219_v46 = vsel %vm1336_vm3, %v2211_v14, %v3765_v61 }
 0xe23   :  { %v2699_v43 = vpop.eup %2698  ;;  %2251 = vst [vmem:[%s3992_s4] sm:$0xff] %v2219_v46 }
 0xe24   :  { %v1998_v16 = vmul.f32 0.6931472, %v2699_v43  ;;  %v1979_v10 = vpop.xlane.xlu1 %1978 }
 0xe25   :  { %2700 = vlog2.f32 %v1979_v10 }
 0xe26   :  { %v2012_v5 = vsub.f32 %v3839_v28, %v1998_v16 }
 0xe28   :  { %v2204_v48 = vsel %vm167_vm1, %v2012_v5, %v3655_v32 }
 0xe29   :  { %v2212_v24 = vsel %vm1160_vm2, %v2204_v48, %v3739_v22 }
 0xe2a   :  { %v2220_v45 = vsel %vm1336_vm3, %v2212_v24, %v3830_v62 }
 0xe2b   :  { %v2701_v61 = vpop.eup %2700  ;;  %2253 = vst [vmem:[%s3992_s4 + $0x10] sm:$0xff] %v2220_v45 }
 0xe2c   :  { %v2000_v37 = vmul.f32 0.6931472, %v2701_v61  ;;  %v1982_v13 = vpop.xlane.xlu2 %1981 }
 0xe2d   :  { %2702 = vlog2.f32 %v1982_v13 }
 0xe2e   :  { %v2013_v50 = vsub.f32 %v3843_v19, %v2000_v37 }
 0xe30   :  { %v2205_v28 = vsel %vm167_vm1, %v2013_v50, %v3720_v58 }
 0xe31   :  { %v2213_v32 = vsel %vm1160_vm2, %v2205_v28, %v3771_v25 }
 0xe32   :  { %v2221_v22 = vsel %vm1336_vm3, %v2213_v32, %v3794_v12 }
 0xe33   :  { %v2703_v62 = vpop.eup %2702  ;;  %2255 = vst [vmem:[%s3992_s4 + $0x20] sm:$0xff] %v2221_v22 }
 0xe34   :  { %v2002_v20 = vmul.f32 0.6931472, %v2703_v62  ;;  %v1985_v59 = vpop.xlane.xlu0 %1984 }
 0xe35   :  { %2704 = vlog2.f32 %v1985_v59 }
 0xe36   :  { %v2014_v17 = vsub.f32 %v3847_v56, %v2002_v20 }
 0xe38   :  { %v2206_v19 = vsel %vm167_vm1, %v2014_v17, %v3715_v54 }
 0xe39   :  { %v2214_v58 = vsel %vm1160_vm2, %v2206_v19, %v3761_v34 }
 0xe3a   :  { %v2222_v25 = vsel %vm1336_vm3, %v2214_v58, %v3769_v49 }
 0xe3b   :  { %v2705_v12 = vpop.eup %2704  ;;  %2257 = vst [vmem:[%s3992_s4 + $0x30] sm:$0xff] %v2222_v25 }
 0xe3c   :  { %v2004_v52 = vmul.f32 0.6931472, %v2705_v12  ;;  %v1988_v31 = vpop.xlane.xlu1 %1987 }
 0xe3d   :  { %2706 = vlog2.f32 %v1988_v31 }
 0xe3e   :  { %v2015_v27 = vsub.f32 %v3851_v3, %v2004_v52 }
 0xe40   :  { %v2207_v56 = vsel %vm167_vm1, %v2015_v27, %v3735_v7 }
 0xe41   :  { %v2215_v54 = vsel %vm1160_vm2, %v2207_v56, %v3743_v21 }
 0xe42   :  { %v2223_v34 = vsel %vm1336_vm3, %v2215_v54, %v3832_v63 }
 0xe43   :  { %v2707_v49 = vpop.eup %2706  ;;  %2259 = vst [vmem:[%s3992_s4 + $0x40] sm:$0xff] %v2223_v34 }
 0xe44   :  { %v2006_v2 = vmul.f32 0.6931472, %v2707_v49  ;;  %v1991_v40 = vpop.xlane.xlu2 %1990 }
 0xe45   :  { %2708 = vlog2.f32 %v1991_v40 }
 0xe46   :  { %v2016_v26 = vsub.f32 %v3855_v36, %v2006_v2 }
 0xe48   :  { %v2208_v3 = vsel %vm167_vm1, %v2016_v26, %v3698_v42 }
 0xe49   :  { %v2216_v7 = vsel %vm1160_vm2, %v2208_v3, %v3777_v51 }
 0xe4a   :  { %v2224_v21 = vsel %vm1336_vm3, %v2216_v7, %v3802_v9 }
 0xe4b   :  { %v2709_v63 = vpop.eup %2708  ;;  %2261 = vst [vmem:[%s3992_s4 + $0x50] sm:$0xff] %v2224_v21 }
 0xe4c   :  { %v2008_v4 = vmul.f32 0.6931472, %v2709_v63  ;;  %v1994_v11 = vpop.xlane.xlu0 %1993  ;;  %v2194_v35 = vpop.permute.xlu2 %2193 }
 0xe4d   :  { %2710 = vlog2.f32 %v1994_v11  ;;  %v2250_v36 = vsel %vm1336_vm3, %v3789_v47, %v2194_v35 }
 0xe4e   :  { %v2017_v42 = vsub.f32 %v3864_v6, %v2008_v4  ;;  %2266 = vst [vmem:[%s3992_s4 + $0x78] sm:$0xff] %v2250_v36 }
 0xe50   :  { %v2209_v51 = vsel %vm167_vm1, %v2017_v42, %v3747_v39 }
 0xe51   :  { %v2217_v9 = vsel %vm1160_vm2, %v2209_v51, %v3767_v55 }
 0xe52   :  { %v2225_v44 = vsel %vm1336_vm3, %v2217_v9, %v3773_v23 }
 0xe53   :  { %v2711_v1 = vpop.eup %2710  ;;  %2263 = vst [vmem:[%s3992_s4 + $0x60] sm:$0xff] %v2225_v44 }
 0xe54   :  { %v2010_v47 = vmul.f32 0.6931472, %v2711_v1  ;;  %v2190_v6 = vpop.permute.xlu1 %2189 }
 0xe55   :  { %v2248_v41 = vsel %vm1336_vm3, %v3759_v15, %v2190_v6 }
 0xe56   :  { %v2018_v29 = vsub.f32 %v3872_v38, %v2010_v47  ;;  %2262 = vst [vmem:[%s3992_s4 + $0x58] sm:$0xff] %v2248_v41 }
 0xe58   :  { %v2210_v39 = vsel %vm167_vm1, %v2018_v29, %v3741_v8 }
 0xe59   :  { %v2218_v55 = vsel %vm1160_vm2, %v2210_v39, %v3745_v60 }
 0xe5a   :  { %v2226_v23 = vsel %vm1336_vm3, %v2218_v55, %v3834_v0 }
 0xe5b   :  { %2265 = vst [vmem:[%s3992_s4 + $0x70] sm:$0xff] %v2226_v23 }
 0xe5f   :  { %v2192_v15 = vpop.permute.xlu0 %2191 }
 0xe60   :  { %v2249_v38 = vsel %vm1336_vm3, %v3807_v30, %v2192_v15 }
 0xe61   :  { %2264 = vst [vmem:[%s3992_s4 + $0x68] sm:$0xff] %v2249_v38 }

</bundles_post_ra>
